<compile_context>
chip_gen: v7x
topology: tpu7x:2x2x1
jax: 0.10.0
libtpu: 0.0.40
codegen_flags: <defaults>
</compile_context>

<pallas_src>
import jax
import jax.numpy as jnp
from jax.experimental import pallas as pl
from jax.experimental.pallas import tpu as pltpu


def _cdiv(a, b):
    return (a + b - 1) // b


def make_detection_loss(conf_weight: float = 1.0, loc_weight: float = 1.0):
    conf_w = float(conf_weight)
    loc_w = float(loc_weight)

    def loss_kernel(n_ref, conf_ref, tgt_ref, locp_ref, loct_ref, out_ref, acc_ref):
        i = pl.program_id(0)

        @pl.when(i == 0)
        def _():
            acc_ref[0] = jnp.float32(0.0)   # sum of per-row NLL (valid rows only)
            acc_ref[1] = jnp.float32(0.0)   # count of valid (non-ignored) rows
            acc_ref[2] = jnp.float32(0.0)   # sum of smooth-L1 terms

        # ---- cross entropy: partial sum over this row tile ----
        logits = conf_ref[...].astype(jnp.float32)              # (T, C_pad), lane-dense
        t, cp = logits.shape
        tgt = tgt_ref[...]                                       # (T, 1) int32
        valid = tgt != -100                                      # ignore_index + row padding

        m = jnp.max(logits, axis=-1, keepdims=True)              # (T, 1)
        lse = jnp.log(jnp.sum(jnp.exp(logits - m), axis=-1, keepdims=True)) + m
        cls_ids = jax.lax.broadcasted_iota(jnp.int32, (t, cp), 1)
        # compare+select+reduce: no explicit one-hot float temporary
        picked = jnp.sum(jnp.where(cls_ids == tgt, logits, 0.0), axis=-1, keepdims=True)
        nll = jnp.where(valid, lse - picked, 0.0)

        acc_ref[0] += jnp.sum(nll)
        acc_ref[1] += jnp.sum(valid.astype(jnp.float32))

        # ---- smooth L1 (beta = 1.0): partial sum over lane-dense box tile ----
        diff = locp_ref[...].astype(jnp.float32) - loct_ref[...].astype(jnp.float32)
        absd = jnp.abs(diff)
        sl1 = jnp.where(absd < 1.0, 0.5 * diff * diff, absd - 0.5)
        acc_ref[2] += jnp.sum(sl1)                               # zero-padded entries add 0

        # ---- finalize on the last tile ----
        @pl.when(i == pl.num_programs(0) - 1)
        def _():
            n_true = n_ref[0].astype(jnp.float32)
            ce = acc_ref[0] / acc_ref[1]           # mean over non-ignored targets (PyTorch)
            ll = acc_ref[2] / (4.0 * n_true)       # mean over all N*4 coords
            out_ref[0, 0] = conf_w * ce + loc_w * ll

    def detection_loss(conf_preds, loc_preds, conf_targets, loc_targets):
        n, c = conf_preds.shape

        # Row tile: 512 rows for realistic anchor counts (keeps double-buffered
        # tiles tiny even on v7x's 64 MiB VMEM), 256 for toy inputs.
        # NOTE: on v7x one could additionally split the row grid across the two
        # TensorCores with a leading "parallel" axis; kept single-axis here.
        tile_n = 512 if n > 256 else 256
        n_pad = _cdiv(n, tile_n) * tile_n
        c_pad = max(128, _cdiv(c, 128) * 128)

        # Lane-dense logits: pad classes / extra rows with a large *finite*
        # negative value so exp() underflows to exactly 0 and no -inf - -inf NaN
        # can appear; padded rows are excluded via target = -100.
        conf_p = jnp.pad(conf_preds, ((0, n_pad - n), (0, c_pad - c)),
                         constant_values=-1e30)

        tgt = conf_targets.astype(jnp.int32).reshape(-1, 1)
        tgt_p = jnp.pad(tgt, ((0, n_pad - n), (0, 0)), constant_values=-100)

        # Lane-dense box coords: (N, 4) -> flat -> (N_pad/32, 128), zero padded
        # (contiguous in HBM, so this is pure layout plumbing).
        def to_lane_dense(x):
            flat = x.reshape(-1)
            flat = jnp.pad(flat, (0, n_pad * 4 - flat.shape[0]))
            return flat.reshape(n_pad // 32, 128)

        locp = to_lane_dense(loc_preds)
        loct = to_lane_dense(loc_targets)

        n_scalar = jnp.array([n], dtype=jnp.int32)

        grid = (n_pad // tile_n,)
        loc_rows = tile_n // 32

        conf_itemsize = jnp.dtype(conf_preds.dtype).itemsize
        loc_itemsize = jnp.dtype(loc_preds.dtype).itemsize
        cost = pl.CostEstimate(
            flops=int(6 * n_pad * c_pad + 8 * n_pad * 4),
            transcendentals=int(n_pad * c_pad),
            bytes_accessed=int(conf_p.size * conf_itemsize + tgt_p.size * 4 +
                               (locp.size + loct.size) * loc_itemsize + 4),
        )

        grid_spec = pltpu.PrefetchScalarGridSpec(
            num_scalar_prefetch=1,
            grid=grid,
            in_specs=[
                pl.BlockSpec((tile_n, c_pad), lambda i, n_ref: (i, 0)),
                pl.BlockSpec((tile_n, 1), lambda i, n_ref: (i, 0)),
                pl.BlockSpec((loc_rows, 128), lambda i, n_ref: (i, 0)),
                pl.BlockSpec((loc_rows, 128), lambda i, n_ref: (i, 0)),
            ],
            out_specs=pl.BlockSpec((1, 1), lambda i, n_ref: (0, 0),
                                   memory_space=pltpu.MemorySpace.SMEM),
            scratch_shapes=[pltpu.SMEM((3,), jnp.float32)],
        )

        out = pl.pallas_call(
            loss_kernel,
            out_shape=jax.ShapeDtypeStruct((1, 1), jnp.float32),
            grid_spec=grid_spec,
            compiler_params=pltpu.CompilerParams(
                dimension_semantics=("arbitrary",)),
            cost_estimate=cost,
        )(n_scalar, conf_p, tgt_p, locp, loct)
        return out[0, 0]

    return detection_loss


def _reference_loss(conf_preds, loc_preds, conf_targets, loc_targets,
                    conf_weight=1.0, loc_weight=1.0):
    # plain-JAX reference mirroring PyTorch semantics (no ignored targets here)
    logits = conf_preds.astype(jnp.float32)
    logz = jax.nn.logsumexp(logits, axis=-1)
    tgt = conf_targets.astype(jnp.int32)
    picked = jnp.take_along_axis(logits, tgt[:, None], axis=-1)[:, 0]
    ce = jnp.mean(logz - picked)
    diff = loc_preds.astype(jnp.float32) - loc_targets.astype(jnp.float32)
    absd = jnp.abs(diff)
    sl1 = jnp.mean(jnp.where(absd < 1.0, 0.5 * diff * diff, absd - 0.5))
    return conf_weight * ce + loc_weight * sl1


if __name__ == "__main__":
    key = jax.random.PRNGKey(0)
    k1, k2, k3, k4 = jax.random.split(key, 4)

    N, C = 8, 16  # 8 predictions, 16 classes, 4 box coords
    conf_preds = jax.random.normal(k1, (N, C), dtype=jnp.float32)
    conf_targets = jax.random.randint(k2, (N,), 0, C, dtype=jnp.int32)
    loc_preds = jax.random.normal(k3, (N, 4), dtype=jnp.float32)
    loc_targets = jax.random.normal(k4, (N, 4), dtype=jnp.float32)

    loss_fn = make_detection_loss(conf_weight=1.0, loc_weight=1.0)
    total = loss_fn(conf_preds, loc_preds, conf_targets, loc_targets)
    jax.block_until_ready(total)

    ref = _reference_loss(conf_preds, loc_preds, conf_targets, loc_targets)
    assert jnp.allclose(total, ref, rtol=1e-5, atol=1e-5), (total, ref)

    print("KERNEL_OK")
</pallas_src>

<mosaic_0001>
module attributes {stable_mosaic.version = 11 : i64} {
  func.func @loss_kernel(%arg0: i32, %arg1: memref<1xi32, #tpu.memory_space<smem>>, %arg2: memref<256x128xf32, #tpu.memory_space<vmem>>, %arg3: memref<256x1xi32, #tpu.memory_space<vmem>>, %arg4: memref<8x128xf32, #tpu.memory_space<vmem>>, %arg5: memref<8x128xf32, #tpu.memory_space<vmem>>, %arg6: memref<1x1xf32, #tpu.memory_space<smem>>, %arg7: memref<3xf32, #tpu.memory_space<smem>>) attributes {dimension_semantics = [#tpu.dimension_semantics<arbitrary>], iteration_bounds = array<i64: 1>, scalar_prefetch = 1 : i64, scratch_operands = 1 : i64, tpu.core_type = #tpu.core_type<tc>, window_params = [{transform_indices = @transform_0, window_bounds = array<i64: 256, 128>}, {transform_indices = @transform_1, window_bounds = array<i64: 256, 1>}, {transform_indices = @transform_2, window_bounds = array<i64: 8, 128>}, {transform_indices = @transform_3, window_bounds = array<i64: 8, 128>}, {transform_indices = @transform_4, window_bounds = array<i64: 1, 1>}]} {
    %c0_i32 = arith.constant 0 : i32
    %0 = arith.cmpi eq, %arg0, %c0_i32 : i32
    %1 = arith.extui %0 : i1 to i32
    %c0_i32_0 = arith.constant 0 : i32
    %2 = arith.cmpi ne, %1, %c0_i32_0 : i32
    scf.if %2 {
      %cst_24 = arith.constant 0.000000e+00 : f32
      %c0_25 = arith.constant 0 : index
      %64 = memref.load %arg7[%c0_25] : memref<3xf32, #tpu.memory_space<smem>>
      memref.store %cst_24, %arg7[%c0_25] : memref<3xf32, #tpu.memory_space<smem>>
      %cst_26 = arith.constant 0.000000e+00 : f32
      %c1_27 = arith.constant 1 : index
      %65 = memref.load %arg7[%c1_27] : memref<3xf32, #tpu.memory_space<smem>>
      memref.store %cst_26, %arg7[%c1_27] : memref<3xf32, #tpu.memory_space<smem>>
      %cst_28 = arith.constant 0.000000e+00 : f32
      %c2_29 = arith.constant 2 : index
      %66 = memref.load %arg7[%c2_29] : memref<3xf32, #tpu.memory_space<smem>>
      memref.store %cst_28, %arg7[%c2_29] : memref<3xf32, #tpu.memory_space<smem>>
    } else {
    }
    %c0 = arith.constant 0 : index
    %c0_1 = arith.constant 0 : index
    %3 = vector.load %arg2[%c0, %c0_1] : memref<256x128xf32, #tpu.memory_space<vmem>>, vector<256x128xf32>
    %c0_2 = arith.constant 0 : index
    %c0_3 = arith.constant 0 : index
    %4 = vector.load %arg3[%c0_2, %c0_3] : memref<256x1xi32, #tpu.memory_space<vmem>>, vector<256x1xi32>
    %c-100_i32 = arith.constant -100 : i32
    %5 = vector.broadcast %c-100_i32 : i32 to vector<256x1xi32>
    %6 = arith.cmpi ne, %4, %5 : vector<256x1xi32>
    %cst = arith.constant dense<0xFF800000> : vector<256xf32>
    %7 = vector.multi_reduction <maximumf>, %3, %cst [1] : vector<256x128xf32> to vector<256xf32>
    %8 = vector.shape_cast %7 : vector<256xf32> to vector<256x1xf32>
    %9 = vector.broadcast %8 : vector<256x1xf32> to vector<256x128xf32>
    %10 = arith.subf %3, %9 : vector<256x128xf32>
    %11 = math.exp %10 : vector<256x128xf32>
    %cst_4 = arith.constant dense<0.000000e+00> : vector<256xf32>
    %12 = vector.multi_reduction <add>, %11, %cst_4 [1] : vector<256x128xf32> to vector<256xf32>
    %13 = vector.shape_cast %12 : vector<256xf32> to vector<256x1xf32>
    %14 = math.log %13 : vector<256x1xf32>
    %15 = arith.addf %14, %8 : vector<256x1xf32>
    %16 = tpu.iota {dimensions = array<i32: 1>} : vector<256x128xi32>
    %17 = vector.broadcast %4 : vector<256x1xi32> to vector<256x128xi32>
    %18 = arith.cmpi eq, %16, %17 : vector<256x128xi32>
    %cst_5 = arith.constant 0.000000e+00 : f32
    %19 = vector.broadcast %cst_5 : f32 to vector<256x128xf32>
    %20 = arith.select %18, %3, %19 : vector<256x128xi1>, vector<256x128xf32>
    %cst_6 = arith.constant dense<0.000000e+00> : vector<256xf32>
    %21 = vector.multi_reduction <add>, %20, %cst_6 [1] : vector<256x128xf32> to vector<256xf32>
    %22 = vector.shape_cast %21 : vector<256xf32> to vector<256x1xf32>
    %23 = arith.subf %15, %22 : vector<256x1xf32>
    %cst_7 = arith.constant 0.000000e+00 : f32
    %24 = vector.broadcast %cst_7 : f32 to vector<256x1xf32>
    %25 = arith.select %6, %23, %24 : vector<256x1xi1>, vector<256x1xf32>
    %c0_8 = arith.constant 0 : index
    %26 = memref.load %arg7[%c0_8] : memref<3xf32, #tpu.memory_space<smem>>
    %27 = vector.shape_cast %25 : vector<256x1xf32> to vector<1x256x1xf32>
    %cst_9 = arith.constant dense<0.000000e+00> : vector<1xf32>
    %28 = vector.multi_reduction <add>, %27, %cst_9 [1, 2] : vector<1x256x1xf32> to vector<1xf32>
    %29 = vector.shape_cast %28 : vector<1xf32> to vector<1x1x1xf32>
    %30 = vector.extract %29[0, 0, 0] : f32 from vector<1x1x1xf32>
    %31 = arith.addf %26, %30 : f32
    %c0_10 = arith.constant 0 : index
    %32 = memref.load %arg7[%c0_10] : memref<3xf32, #tpu.memory_space<smem>>
    memref.store %31, %arg7[%c0_10] : memref<3xf32, #tpu.memory_space<smem>>
    %c1 = arith.constant 1 : index
    %33 = memref.load %arg7[%c1] : memref<3xf32, #tpu.memory_space<smem>>
    %34 = arith.extui %6 : vector<256x1xi1> to vector<256x1xi32>
    %35 = arith.sitofp %34 : vector<256x1xi32> to vector<256x1xf32>
    %36 = vector.shape_cast %35 : vector<256x1xf32> to vector<1x256x1xf32>
    %cst_11 = arith.constant dense<0.000000e+00> : vector<1xf32>
    %37 = vector.multi_reduction <add>, %36, %cst_11 [1, 2] : vector<1x256x1xf32> to vector<1xf32>
    %38 = vector.shape_cast %37 : vector<1xf32> to vector<1x1x1xf32>
    %39 = vector.extract %38[0, 0, 0] : f32 from vector<1x1x1xf32>
    %40 = arith.addf %33, %39 : f32
    %c1_12 = arith.constant 1 : index
    %41 = memref.load %arg7[%c1_12] : memref<3xf32, #tpu.memory_space<smem>>
    memref.store %40, %arg7[%c1_12] : memref<3xf32, #tpu.memory_space<smem>>
    %c0_13 = arith.constant 0 : index
    %c0_14 = arith.constant 0 : index
    %42 = vector.load %arg4[%c0_13, %c0_14] : memref<8x128xf32, #tpu.memory_space<vmem>>, vector<8x128xf32>
    %c0_15 = arith.constant 0 : index
    %c0_16 = arith.constant 0 : index
    %43 = vector.load %arg5[%c0_15, %c0_16] : memref<8x128xf32, #tpu.memory_space<vmem>>, vector<8x128xf32>
    %44 = arith.subf %42, %43 : vector<8x128xf32>
    %45 = math.absf %44 : vector<8x128xf32>
    %cst_17 = arith.constant 1.000000e+00 : f32
    %46 = vector.broadcast %cst_17 : f32 to vector<8x128xf32>
    %47 = arith.cmpf olt, %45, %46 : vector<8x128xf32>
    %cst_18 = arith.constant 5.000000e-01 : f32
    %48 = vector.broadcast %cst_18 : f32 to vector<8x128xf32>
    %49 = arith.mulf %48, %44 : vector<8x128xf32>
    %50 = arith.mulf %49, %44 : vector<8x128xf32>
    %cst_19 = arith.constant 5.000000e-01 : f32
    %51 = vector.broadcast %cst_19 : f32 to vector<8x128xf32>
    %52 = arith.subf %45, %51 : vector<8x128xf32>
    %53 = arith.select %47, %50, %52 : vector<8x128xi1>, vector<8x128xf32>
    %c2 = arith.constant 2 : index
    %54 = memref.load %arg7[%c2] : memref<3xf32, #tpu.memory_space<smem>>
    %55 = vector.shape_cast %53 : vector<8x128xf32> to vector<1x8x128xf32>
    %cst_20 = arith.constant dense<0.000000e+00> : vector<1xf32>
    %56 = vector.multi_reduction <add>, %55, %cst_20 [1, 2] : vector<1x8x128xf32> to vector<1xf32>
    %57 = vector.shape_cast %56 : vector<1xf32> to vector<1x1x1xf32>
    %58 = vector.extract %57[0, 0, 0] : f32 from vector<1x1x1xf32>
    %59 = arith.addf %54, %58 : f32
    %c2_21 = arith.constant 2 : index
    %60 = memref.load %arg7[%c2_21] : memref<3xf32, #tpu.memory_space<smem>>
    memref.store %59, %arg7[%c2_21] : memref<3xf32, #tpu.memory_space<smem>>
    %c0_i32_22 = arith.constant 0 : i32
    %61 = arith.cmpi eq, %arg0, %c0_i32_22 : i32
    %62 = arith.extui %61 : i1 to i32
    %c0_i32_23 = arith.constant 0 : i32
    %63 = arith.cmpi ne, %62, %c0_i32_23 : i32
    scf.if %63 {
      %c0_24 = arith.constant 0 : index
      %64 = memref.load %arg1[%c0_24] : memref<1xi32, #tpu.memory_space<smem>>
      %65 = arith.sitofp %64 : i32 to f32
      %c0_25 = arith.constant 0 : index
      %66 = memref.load %arg7[%c0_25] : memref<3xf32, #tpu.memory_space<smem>>
      %c1_26 = arith.constant 1 : index
      %67 = memref.load %arg7[%c1_26] : memref<3xf32, #tpu.memory_space<smem>>
      %68 = arith.divf %66, %67 : f32
      %c2_27 = arith.constant 2 : index
      %69 = memref.load %arg7[%c2_27] : memref<3xf32, #tpu.memory_space<smem>>
      %cst_28 = arith.constant 4.000000e+00 : f32
      %70 = arith.mulf %cst_28, %65 : f32
      %71 = arith.divf %69, %70 : f32
      %cst_29 = arith.constant 1.000000e+00 : f32
      %72 = arith.mulf %cst_29, %68 : f32
      %cst_30 = arith.constant 1.000000e+00 : f32
      %73 = arith.mulf %cst_30, %71 : f32
      %74 = arith.addf %72, %73 : f32
      %c0_31 = arith.constant 0 : index
      %c0_32 = arith.constant 0 : index
      %75 = memref.load %arg6[%c0_31, %c0_32] : memref<1x1xf32, #tpu.memory_space<smem>>
      memref.store %74, %arg6[%c0_31, %c0_32] : memref<1x1xf32, #tpu.memory_space<smem>>
    } else {
    }
    return
  }
  func.func @transform_0(%arg0: i32, %arg1: memref<1xi32, #tpu.memory_space<smem>>) -> (i32, i32) {
    %c0_i32 = arith.constant 0 : i32
    %c0_i32_0 = arith.constant 0 : i32
    return %arg0, %c0_i32 : i32, i32
  }
  func.func @transform_1(%arg0: i32, %arg1: memref<1xi32, #tpu.memory_space<smem>>) -> (i32, i32) {
    %c0_i32 = arith.constant 0 : i32
    %c0_i32_0 = arith.constant 0 : i32
    return %arg0, %c0_i32 : i32, i32
  }
  func.func @transform_2(%arg0: i32, %arg1: memref<1xi32, #tpu.memory_space<smem>>) -> (i32, i32) {
    %c0_i32 = arith.constant 0 : i32
    %c0_i32_0 = arith.constant 0 : i32
    return %arg0, %c0_i32 : i32, i32
  }
  func.func @transform_3(%arg0: i32, %arg1: memref<1xi32, #tpu.memory_space<smem>>) -> (i32, i32) {
    %c0_i32 = arith.constant 0 : i32
    %c0_i32_0 = arith.constant 0 : i32
    return %arg0, %c0_i32 : i32, i32
  }
  func.func @transform_4(%arg0: i32, %arg1: memref<1xi32, #tpu.memory_space<smem>>) -> (i32, i32) {
    %c0_i32 = arith.constant 0 : i32
    %c0_i32_0 = arith.constant 0 : i32
    %c0_i32_1 = arith.constant 0 : i32
    return %c0_i32, %c0_i32_0 : i32, i32
  }
}

</mosaic_0001>

<bundles_post_ra>
// kernel: tpu_custom_call.1
= control target key start
LH: loop header
LB: loop body
LE: loop exit
PB: predicated region body
PF: predicated region fallthrough
CT: control target
= control target key end

     0   :  { %s2178_s0 = inlined_call_operand.<no memory space> [shape: s32[1], index: 0, kind: input, shape index: {}]   ;;  %s2179_s1 = inlined_call_operand.vmem [shape: f32[256,128], index: 1, kind: input, shape index: {}]   ;;  %s2180_s2 = inlined_call_operand.vmem [shape: s32[256,1], index: 2, kind: input, shape index: {}]   ;;  %s2181_s3 = inlined_call_operand.vmem [shape: f32[8,128], index: 3, kind: input, shape index: {}]   ;;  %s2182_s4 = inlined_call_operand.vmem [shape: f32[8,128], index: 4, kind: input, shape index: {}]   ;;  %s2183_s5 = inlined_call_operand.hbm [shape: f32[1,1], index: 5, kind: output, shape index: {}]  }
   0x1   :  { %v1241_v0 = vld [vmem:[%s2179_s1] sm:$0xff]  ;;  %v1246_v1 = vld [vmem:[%s2179_s1 + $0x10] sm:$0xff]  ;;  %v1253_v2 = vld [vmem:[%s2179_s1 + $0x8] sm:$0xff] }
   0x2   :  { %126 = vmax.xlane.f32.xlu0 %v1241_v0  ;;  %130 = vmax.xlane.f32.xlu1 %v1246_v1  ;;  %v1258_v3 = vld [vmem:[%s2179_s1 + $0x18] sm:$0xff]  ;;  %v1265_v4 = vld [vmem:[%s2179_s1 + $0x20] sm:$0xff]  ;;  %v1270_v5 = vld [vmem:[%s2179_s1 + $0x28] sm:$0xff] }
   0x6   :  { %128 = vmax.xlane.f32.xlu0 %v1253_v2  ;;  %132 = vmax.xlane.f32.xlu1 %v1258_v3 }
   0x7   :  { %11 = vsyncpa [#allocation6], 0  ;;  %v1277_v6 = vld [vmem:[%s2179_s1 + $0x38] sm:$0xff]  ;;  %v1282_v7 = vld [vmem:[%s2179_s1 + $0x30] sm:$0xff]  ;;  %v1205_v24 = vmov 0   ;;  %vm737_vm4 = vcmask 7168   ;;  %s979_s25 = scvt.s32.f32 %s2178_s0 }
   0x8   :  { %v1289_v8 = vld [vmem:[%s2179_s1 + $0x48] sm:$0xff]  ;;  %v1294_v9 = vld [vmem:[%s2179_s1 + $0x40] sm:$0xff]  ;;  %v1301_v10 = vld [vmem:[%s2179_s1 + $0x58] sm:$0xff]  ;;  %1059 = vset.pattern.permute.xlu1 %v1205_v24  ;;  %1058 = vset.pattern.permute.xlu0 %v1205_v24  ;;  %s1193_s11 = scalar_lea.hbm %s2183_s5, 16 }
   0x9   :  { %v1306_v11 = vld [vmem:[%s2179_s1 + $0x50] sm:$0xff]  ;;  %v1313_v12 = vld [vmem:[%s2179_s1 + $0x68] sm:$0xff]  ;;  %v1318_v13 = vld [vmem:[%s2179_s1 + $0x60] sm:$0xff]  ;;  %s987_s26 = smul.f32 4.0, %s979_s25  ;;  %p1194_p0 = scmp.ne.s32.totalorder %s2183_s5, %s1193_s11 }
   0xa   :  { %134 = vmax.xlane.f32.xlu0 %v1265_v4  ;;  %136 = vmax.xlane.f32.xlu1 %v1270_v5  ;;  %v1325_v14 = vld [vmem:[%s2179_s1 + $0x78] sm:$0xff]  ;;  %v1330_v15 = vld [vmem:[%s2179_s1 + $0x70] sm:$0xff]  ;;  %v1337_v16 = vld [vmem:[%s2179_s1 + $0x88] sm:$0xff]  ;;  %p1197_p1 = scmp.lt.u32.totalorder %s1193_s11, %s2183_s5 }
   0xb   :  { %v1342_v17 = vld [vmem:[%s2179_s1 + $0x80] sm:$0xff]  ;;  %v1349_v18 = vld [vmem:[%s2179_s1 + $0x98] sm:$0xff]  ;;  %v1354_v19 = vld [vmem:[%s2179_s1 + $0x90] sm:$0xff] }
   0xc   :  { %v1361_v20 = vld [vmem:[%s2179_s1 + $0xa8] sm:$0xff]  ;;  %v1366_v21 = vld [vmem:[%s2179_s1 + $0xa0] sm:$0xff]  ;;  %v1373_v22 = vld [vmem:[%s2179_s1 + $0xb8] sm:$0xff]  ;;  %p1199_p2 = pnand %p1197_p1, %p1194_p0 }
   0xd   :  { %v1378_v23 = vld [vmem:[%s2179_s1 + $0xb0] sm:$0xff]  ;;  %v1385_v25 = vld [vmem:[%s2179_s1 + $0xc8] sm:$0xff]  ;;  %v1390_v26 = vld [vmem:[%s2179_s1 + $0xc0] sm:$0xff] }
   0xe   :  { %140 = vmax.xlane.f32.xlu1 %v1277_v6  ;;  %138 = vmax.xlane.f32.xlu0 %v1282_v7  ;;  %2287 = vst [vmem:[#allocation8_spill] sm:$0xff] %v1385_v25  ;;  %2288 = vst [vmem:[#allocation9_spill] sm:$0xff] %v1390_v26  ;;  %v1397_v27 = vld [vmem:[%s2179_s1 + $0xd8] sm:$0xff]  ;;  %v1402_v28 = vld [vmem:[%s2179_s1 + $0xd0] sm:$0xff] }
   0xf   :  { %2289 = vst [vmem:[#allocation10_spill] sm:$0xff] %v1397_v27  ;;  %2290 = vst [vmem:[#allocation11_spill] sm:$0xff] %v1402_v28  ;;  %v1409_v29 = vld [vmem:[%s2179_s1 + $0xe8] sm:$0xff]  ;;  %v1414_v30 = vld [vmem:[%s2179_s1 + $0xe0] sm:$0xff] }
  0x10   :  { %2291 = vst [vmem:[#allocation12_spill] sm:$0xff] %v1409_v29  ;;  %2292 = vst [vmem:[#allocation13_spill] sm:$0xff] %v1414_v30  ;;  %v1421_v31 = vld [vmem:[%s2179_s1 + $0xf8] sm:$0xff]  ;;  %v1426_v32 = vld [vmem:[%s2179_s1 + $0xf0] sm:$0xff] }
  0x11   :  { %2293 = vst [vmem:[#allocation14_spill] sm:$0xff] %v1421_v31  ;;  %2294 = vst [vmem:[#allocation15_spill] sm:$0xff] %v1426_v32  ;;  %v1457_v57 = vld [vmem:[%s2180_s2] sm:$0xff]  ;;  %v1462_v58 = vld [vmem:[%s2180_s2 + $0x8] sm:$0xff] }
  0x12   :  { %144 = vmax.xlane.f32.xlu1 %v1289_v8  ;;  %142 = vmax.xlane.f32.xlu0 %v1294_v9  ;;  %2301 = vst [vmem:[#allocation22_spill] sm:$0xff] %v1457_v57  ;;  %v1469_v59 = vld [vmem:[%s2180_s2 + $0x18] sm:$0xff]  ;;  %v1474_v60 = vld [vmem:[%s2180_s2 + $0x10] sm:$0xff]  ;;  %v1481_v61 = vld [vmem:[%s2180_s2 + $0x28] sm:$0xff]  ;;  %vm94_vm0 = vcmp.ne.s32.totalorder %v1457_v57, 4294967196  ;;  %vm95_vm1 = vcmp.ne.s32.totalorder %v1462_v58, 4294967196 }
  0x13   :  { %v1486_v62 = vld [vmem:[%s2180_s2 + $0x20] sm:$0xff]  ;;  %v1493_v63 = vld [vmem:[%s2180_s2 + $0x38] sm:$0xff]  ;;  %v1498_v24 = vld [vmem:[%s2180_s2 + $0x30] sm:$0xff]  ;;  %vm96_vm5 = vcmp.ne.s32.totalorder %v1474_v60, 4294967196  ;;  %vm97_vm8 = vcmp.ne.s32.totalorder %v1469_v59, 4294967196  ;;  %vm99_vm12 = vcmp.ne.s32.totalorder %v1481_v61, 4294967196 }
  0x14   :  { %vm98_vm10 = vcmp.ne.s32.totalorder %v1486_v62, 4294967196  ;;  %vm100_vm14 = vcmp.ne.s32.totalorder %v1498_v24, 4294967196 }
  0x16   :  { %148 = vmax.xlane.f32.xlu1 %v1301_v10  ;;  %146 = vmax.xlane.f32.xlu0 %v1306_v11 }
  0x1a   :  { %152 = vmax.xlane.f32.xlu1 %v1313_v12  ;;  %150 = vmax.xlane.f32.xlu0 %v1318_v13 }
  0x1e   :  { %156 = vmax.xlane.f32.xlu1 %v1325_v14  ;;  %154 = vmax.xlane.f32.xlu0 %v1330_v15 }
  0x22   :  { %160 = vmax.xlane.f32.xlu1 %v1337_v16  ;;  %158 = vmax.xlane.f32.xlu0 %v1342_v17 }
  0x26   :  { %164 = vmax.xlane.f32.xlu1 %v1349_v18  ;;  %162 = vmax.xlane.f32.xlu0 %v1354_v19 }
  0x2a   :  { %168 = vmax.xlane.f32.xlu1 %v1361_v20  ;;  %166 = vmax.xlane.f32.xlu0 %v1366_v21 }
  0x2e   :  { %172 = vmax.xlane.f32.xlu1 %v1373_v22  ;;  %170 = vmax.xlane.f32.xlu0 %v1378_v23 }
  0x32   :  { %176 = vmax.xlane.f32.xlu1 %v1385_v25  ;;  %174 = vmax.xlane.f32.xlu0 %v1390_v26 }
  0x36   :  { %180 = vmax.xlane.f32.xlu1 %v1397_v27  ;;  %178 = vmax.xlane.f32.xlu0 %v1402_v28 }
  0x3a   :  { %184 = vmax.xlane.f32.xlu1 %v1409_v29  ;;  %182 = vmax.xlane.f32.xlu0 %v1414_v30 }
  0x3e   :  { %188 = vmax.xlane.f32.xlu1 %v1421_v31  ;;  %186 = vmax.xlane.f32.xlu0 %v1426_v32 }
  0x8f   :  { %v1430_v33 = vpop.xlane.xlu0 %126  ;;  %v1432_v34 = vpop.xlane.xlu1 %130 }
  0x90   :  { %2295 = vst [vmem:[#allocation16_spill] sm:$0xff] %v1430_v33  ;;  %2296 = vst [vmem:[#allocation17_spill] sm:$0xff] %v1432_v34  ;;  %v190_v35 = vsub.f32 %v1241_v0, %v1430_v33  ;;  %v192_v36 = vsub.f32 %v1246_v1, %v1432_v34  ;;  %v1623_v33 = vld [vmem:[%s2180_s2 + $0xf8] sm:$0xff] }
  0x91   :  { %2320 = vst [vmem:[#allocation41_spill] sm:$0xff] %v1623_v33 }
  0x92   :  { %v222_v37 = vmul.f32 1.442695, %v190_v35  ;;  %v226_v38 = vmul.f32 1.442695, %v192_v36  ;;  %v1505_v35 = vld [vmem:[%s2180_s2 + $0x48] sm:$0xff]  ;;  %v1510_v36 = vld [vmem:[%s2180_s2 + $0x40] sm:$0xff] }
  0x93   :  { %v1438_v39 = vpop.xlane.xlu0 %128  ;;  %v1440_v40 = vpop.xlane.xlu1 %132 }
  0x94   :  { %2297 = vst [vmem:[#allocation18_spill] sm:$0xff] %v1438_v39  ;;  %2298 = vst [vmem:[#allocation19_spill] sm:$0xff] %v1440_v40  ;;  %1060 = vpow2.f32 %v222_v37  ;;  %v191_v41 = vsub.f32 %v1253_v2, %v1438_v39  ;;  %v193_v42 = vsub.f32 %v1258_v3, %v1440_v40  ;;  %v1517_v37 = vld [vmem:[%s2180_s2 + $0x58] sm:$0xff]  ;;  %v1612_v40 = vld [vmem:[%s2180_s2 + $0xa0] sm:$0xff] }
  0x95   :  { %1062 = vpow2.f32 %v226_v38  ;;  %v1522_v38 = vld [vmem:[%s2180_s2 + $0x50] sm:$0xff]  ;;  %2317 = vst [vmem:[#allocation38_spill] sm:$0xff] %v1612_v40 }
  0x96   :  { %v224_v43 = vmul.f32 1.442695, %v191_v41  ;;  %v228_v44 = vmul.f32 1.442695, %v193_v42  ;;  %v1529_v41 = vld [vmem:[%s2180_s2 + $0x68] sm:$0xff]  ;;  %v1534_v42 = vld [vmem:[%s2180_s2 + $0x60] sm:$0xff] }
  0x97   :  { %v1446_v45 = vpop.xlane.xlu0 %134  ;;  %v1448_v46 = vpop.xlane.xlu1 %136  ;;  %2302 = vst [vmem:[#allocation23_spill] sm:$0xff] %v1529_v41 }
  0x98   :  { %2299 = vst [vmem:[#allocation20_spill] sm:$0xff] %v1446_v45  ;;  %2300 = vst [vmem:[#allocation21_spill] sm:$0xff] %v1448_v46  ;;  %1064 = vpow2.f32 %v224_v43  ;;  %v194_v47 = vsub.f32 %v1265_v4, %v1446_v45  ;;  %v195_v48 = vsub.f32 %v1270_v5, %v1448_v46  ;;  %v1541_v43 = vld [vmem:[%s2180_s2 + $0x80] sm:$0xff]  ;;  %v1600_v46 = vld [vmem:[%s2180_s2 + $0x98] sm:$0xff] }
  0x99   :  { %1066 = vpow2.f32 %v228_v44  ;;  %2303 = vst [vmem:[#allocation24_spill] sm:$0xff] %v1541_v43  ;;  %v1546_v44 = vld [vmem:[%s2180_s2 + $0x70] sm:$0xff]  ;;  %2315 = vst [vmem:[#allocation36_spill] sm:$0xff] %v1600_v46  ;;  %v1607_v45 = vld [vmem:[%s2180_s2 + $0xe8] sm:$0xff] }
  0x9a   :  { %v230_v49 = vmul.f32 1.442695, %v194_v47  ;;  %v232_v50 = vmul.f32 1.442695, %v195_v48  ;;  %2304 = vst [vmem:[#allocation25_spill] sm:$0xff] %v1546_v44  ;;  %v1553_v47 = vld [vmem:[%s2180_s2 + $0xa8] sm:$0xff] }
  0x9b   :  { %2305 = vst [vmem:[#allocation26_spill] sm:$0xff] %v1553_v47  ;;  %v1558_v48 = vld [vmem:[%s2180_s2 + $0x78] sm:$0xff]  ;;  %2316 = vst [vmem:[#allocation37_spill] sm:$0xff] %v1607_v45 }
  0x9c   :  { %1068 = vpow2.f32 %v230_v49  ;;  %2306 = vst [vmem:[#allocation27_spill] sm:$0xff] %v1558_v48  ;;  %v1565_v49 = vld [vmem:[%s2180_s2 + $0xb8] sm:$0xff] }
  0x9d   :  { %1070 = vpow2.f32 %v232_v50  ;;  %2307 = vst [vmem:[#allocation28_spill] sm:$0xff] %v1565_v49  ;;  %v1570_v50 = vld [vmem:[%s2180_s2 + $0x88] sm:$0xff] }
  0x9e   :  { %v1061_v51 = vpop.eup %1060  ;;  %2308 = vst [vmem:[#allocation29_spill] sm:$0xff] %v1570_v50 }
  0x9f   :  { %286 = vadd.xlane.f32.xlu1 %v1061_v51  ;;  %v1063_v52 = vpop.eup %1062  ;;  %v1572_v51 = vpop.xlane.xlu1 %140 }
  0xa0   :  { %2309 = vst [vmem:[#allocation30_spill] sm:$0xff] %v1572_v51 }
  0xa2   :  { %v1065_v53 = vpop.eup %1064 }
  0xa3   :  { %290 = vadd.xlane.f32.xlu1 %v1063_v52  ;;  %288 = vadd.xlane.f32.xlu0 %v1065_v53  ;;  %v1067_v54 = vpop.eup %1066  ;;  %v1579_v52 = vld [vmem:[%s2180_s2 + $0xc8] sm:$0xff]  ;;  %v1584_v53 = vld [vmem:[%s2180_s2 + $0x90] sm:$0xff] }
  0xa4   :  { %2310 = vst [vmem:[#allocation31_spill] sm:$0xff] %v1579_v52  ;;  %2311 = vst [vmem:[#allocation32_spill] sm:$0xff] %v1584_v53 }
  0xa6   :  { %v1069_v55 = vpop.eup %1068 }
  0xa7   :  { %292 = vadd.xlane.f32.xlu0 %v1067_v54  ;;  %294 = vadd.xlane.f32.xlu1 %v1069_v55  ;;  %v1071_v56 = vpop.eup %1070  ;;  %v1587_v54 = vpop.xlane.xlu1 %144 }
  0xa8   :  { %2312 = vst [vmem:[#allocation33_spill] sm:$0xff] %v1587_v54  ;;  %v1589_v55 = vpop.xlane.xlu0 %138 }
  0xa9   :  { %2313 = vst [vmem:[#allocation34_spill] sm:$0xff] %v1589_v55 }
  0xab   :  { %296 = vadd.xlane.f32.xlu1 %v1071_v56  ;;  %v1595_v56 = vld [vmem:[%s2180_s2 + $0xe0] sm:$0xff]  ;;  %v1614_v39 = vpop.xlane.xlu1 %148 }
  0xac   :  { %2314 = vst [vmem:[#allocation35_spill] sm:$0xff] %v1595_v56  ;;  %2318 = vst [vmem:[#allocation39_spill] sm:$0xff] %v1614_v39  ;;  %v1616_v34 = vpop.xlane.xlu0 %142 }
  0xad   :  { %2319 = vst [vmem:[#allocation40_spill] sm:$0xff] %v1616_v34 }
  0xbc   :  { %449 = vperm.xlu1 %1059, %v1457_v57  }
  0xbd   :  { %452 = vperm.xlu0 %1058, %v1462_v58   ;;  %v2384_v58 = vld [vmem:[#allocation20_spill] sm:$0xff] }
  0xc0   :  { %458 = vperm.xlu1 %1059, %v1469_v59  }
  0xc1   :  { %455 = vperm.xlu0 %1058, %v1474_v60  }
  0xc4   :  { %464 = vperm.xlu1 %1059, %v1481_v61  }
  0xc5   :  { %461 = vperm.xlu0 %1058, %v1486_v62  }
  0xc8   :  { %470 = vperm.xlu1 %1059, %v1493_v63  }
  0xc9   :  { %467 = vperm.xlu0 %1058, %v1498_v24  }
  0xcc   :  { %476 = vperm.xlu1 %1059, %v1505_v35  }
  0xcd   :  { %473 = vperm.xlu0 %1058, %v1510_v36  }
  0xd0   :  { %482 = vperm.xlu1 %1059, %v1517_v37  }
  0xd1   :  { %479 = vperm.xlu0 %1058, %v1522_v38  }
  0xd4   :  { %488 = vperm.xlu1 %1059, %v1529_v41  }
  0xd5   :  { %485 = vperm.xlu0 %1058, %v1534_v42  }
  0xd8   :  { %497 = vperm.xlu1 %1059, %v1541_v43  }
  0xd9   :  { %491 = vperm.xlu0 %1058, %v1546_v44  }
  0xdc   :  { %512 = vperm.xlu1 %1059, %v1553_v47   ;;  %v1645_v47 = vld [vmem:[%s2180_s2 + $0xd0] sm:$0xff] }
  0xdd   :  { %494 = vperm.xlu0 %1058, %v1558_v48   ;;  %2324 = vst [vmem:[#allocation45_spill] sm:$0xff] %v1645_v47 }
  0xe0   :  { %518 = vperm.xlu1 %1059, %v1565_v49   ;;  %v1633_v49 = vpop.xlane.xlu0 %146 }
  0xe1   :  { %500 = vperm.xlu0 %1058, %v1570_v50   ;;  %2322 = vst [vmem:[#allocation43_spill] sm:$0xff] %v1633_v49 }
  0xe4   :  { %524 = vperm.xlu1 %1059, %v1579_v52   ;;  %v1631_v52 = vpop.xlane.xlu1 %152 }
  0xe5   :  { %503 = vperm.xlu0 %1058, %v1584_v53  }
  0xe8   :  { %533 = vperm.xlu1 %1059, %v1595_v56   ;;  %v1628_v56 = vld [vmem:[%s2180_s2 + $0xb0] sm:$0xff]  ;;  %v1647_v31 = vpop.xlane.xlu1 %156 }
  0xe9   :  { %506 = vperm.xlu0 %1058, %v1600_v46   ;;  %2321 = vst [vmem:[#allocation42_spill] sm:$0xff] %v1628_v56  ;;  %v197_v46 = vsub.f32 %v1277_v6, %v1572_v51 }
  0xeb   :  { %v236_v53 = vmul.f32 1.442695, %v197_v46 }
  0xec   :  { %536 = vperm.xlu1 %1059, %v1607_v45   ;;  %v1639_v45 = vld [vmem:[%s2180_s2 + $0xc0] sm:$0xff] }
  0xed   :  { %509 = vperm.xlu0 %1058, %v1612_v40   ;;  %2323 = vst [vmem:[#allocation44_spill] sm:$0xff] %v1639_v45  ;;  %v1657_v40 = vpop.xlane.xlu1 %160  ;;  %1072 = vpow2.f32 %v236_v53 }
  0xf0   :  { %542 = vperm.xlu1 %1059, %v1623_v33   ;;  %v1649_v33 = vpop.xlane.xlu0 %150 }
  0xf1   :  { %515 = vperm.xlu0 %1058, %v1628_v56   ;;  %v1655_v56 = vld [vmem:[%s2180_s2 + $0xd8] sm:$0xff] }
  0xf2   :  { %2325 = vst [vmem:[#allocation46_spill] sm:$0xff] %v1655_v56 }
  0xf4   :  { %v1659_v32 = vpop.xlane.xlu0 %154 }
  0xf5   :  { %521 = vperm.xlu0 %1058, %v1639_v45   ;;  %v1665_v45 = vld [vmem:[%s2180_s2 + $0xf0] sm:$0xff] }
  0xf6   :  { %2326 = vst [vmem:[#allocation47_spill] sm:$0xff] %v1665_v45 }
  0xf7   :  { %v1073_v28 = vpop.eup %1072 }
  0xf8   :  { %v1672_v29 = vpop.xlane.xlu0 %158 }
  0xf9   :  { %527 = vperm.xlu0 %1058, %v1645_v47   ;;  %v1670_v47 = vpop.xlane.xlu1 %164 }
  0xfc   :  { %v1676_v50 = vpop.xlane.xlu0 %162 }
  0xfd   :  { %530 = vperm.xlu0 %1058, %v1655_v56   ;;  %v1674_v30 = vpop.xlane.xlu1 %168  ;;  %v196_v56 = vsub.f32 %v1282_v7, %v1589_v55 }
  0xff   :  { %v234_v51 = vmul.f32 1.442695, %v196_v56 }
 0x100   :  { %v1682_v43 = vpop.xlane.xlu0 %166 }
 0x101   :  { %539 = vperm.xlu0 %1058, %v1665_v45   ;;  %v1680_v27 = vpop.xlane.xlu1 %172  ;;  %v198_v45 = vsub.f32 %v1294_v9, %v1616_v34  ;;  %1074 = vpow2.f32 %v234_v51 }
 0x103   :  { %v238_v25 = vmul.f32 1.442695, %v198_v45 }
 0x104   :  { %v1688_v46 = vpop.xlane.xlu0 %170 }
 0x105   :  { %v1686_v48 = vpop.xlane.xlu1 %176  ;;  %1076 = vpow2.f32 %v238_v25 }
 0x106   :  { %2327 = vst [vmem:[#allocation48_spill] sm:$0xff] %v1686_v48 }
 0x108   :  { %v1692_v55 = vpop.xlane.xlu0 %174 }
 0x109   :  { %v1690_v53 = vpop.xlane.xlu1 %180  ;;  %2329 = vst [vmem:[#allocation50_spill] sm:$0xff] %v1692_v55 }
 0x10a   :  { %2328 = vst [vmem:[#allocation49_spill] sm:$0xff] %v1690_v53  ;;  %v446_v53 = vlaneseq }
 0x10b   :  { %v1075_v44 = vpop.eup %1074 }
 0x10c   :  { %v1696_v56 = vpop.xlane.xlu0 %178 }
 0x10d   :  { %v1694_v26 = vpop.xlane.xlu1 %184  ;;  %2331 = vst [vmem:[#allocation52_spill] sm:$0xff] %v1696_v56 }
 0x10e   :  { %2330 = vst [vmem:[#allocation51_spill] sm:$0xff] %v1694_v26 }
 0x10f   :  { %v1077_v34 = vpop.eup %1076 }
 0x110   :  { %v1700_v48 = vpop.xlane.xlu0 %182 }
 0x111   :  { %2333 = vst [vmem:[#allocation54_spill] sm:$0xff] %v1700_v48 }
 0x114   :  { %300 = vadd.xlane.f32.xlu1 %v1073_v28  ;;  %v1698_v28 = vpop.xlane.xlu1 %188  ;;  %v1704_v45 = vpop.xlane.xlu0 %186 }
 0x115   :  { %2332 = vst [vmem:[#allocation53_spill] sm:$0xff] %v1698_v28  ;;  %2335 = vst [vmem:[#allocation56_spill] sm:$0xff] %v1704_v45 }
 0x120   :  { %298 = vadd.xlane.f32.xlu0 %v1075_v44  ;;  %v199_v44 = vsub.f32 %v1289_v8, %v1587_v54 }
 0x122   :  { %v240_v56 = vmul.f32 1.442695, %v199_v44  ;;  %v1206_v44 = vmov 0.0  }
 0x124   :  { %302 = vadd.xlane.f32.xlu0 %v1077_v34  ;;  %v200_v34 = vsub.f32 %v1306_v11, %v1633_v49  ;;  %1078 = vpow2.f32 %v240_v56  ;;  %v1010_v56 = vsel %vm95_vm1, 1.0, %v1206_v44 }
 0x12c   :  { %v1702_v41 = vpop.xlane.xlu1 %286 }
 0x12d   :  { %2334 = vst [vmem:[#allocation55_spill] sm:$0xff] %v1702_v41  ;;  %v1720_v41 = vand.u32 127, %v446_v53  ;;  %v1009_v53 = vsel %vm94_vm0, 1.0, %v1206_v44 }
 0x12e   :  { %v878_v57 = vsel %vm737_vm4, %v1009_v53, 0.0 }
 0x130   :  { %v1706_v25 = vpop.xlane.xlu1 %290  ;;  %v1708_v51 = vpop.xlane.xlu0 %288 }
 0x131   :  { %2336 = vst [vmem:[#allocation57_spill] sm:$0xff] %v1706_v25  ;;  %2337 = vst [vmem:[#allocation58_spill] sm:$0xff] %v1708_v51  ;;  %v201_v51 = vsub.f32 %v1301_v10, %v1614_v39  ;;  %v242_v25 = vmul.f32 1.442695, %v200_v34 }
 0x133   :  { %v244_v39 = vmul.f32 1.442695, %v201_v51  ;;  %1080 = vpow2.f32 %v242_v25 }
 0x134   :  { %v1712_v26 = vpop.xlane.xlu1 %294  ;;  %v1716_v28 = vpop.xlane.xlu0 %292 }
 0x135   :  { %2338 = vst [vmem:[#allocation59_spill] sm:$0xff] %v1712_v26  ;;  %v879_v26 = vsel %vm737_vm4, %v1010_v56, 0.0  ;;  %1082 = vpow2.f32 %v244_v39 }
 0x136   :  { %v880_v51 = vadd.f32 %v879_v26, %v878_v57  ;;  %v204_v57 = vsub.f32 %v1330_v15, %v1659_v32 }
 0x138   :  { %v1718_v48 = vpop.xlane.xlu1 %296 }
 0x139   :  { %2339 = vst [vmem:[#allocation60_spill] sm:$0xff] %v1718_v48 }
 0x13c   :  { %v450_v45 = vpop.permute.xlu1 %449  ;;  %v453_v54 = vpop.permute.xlu0 %452 }
 0x13d   :  { %vm544_vm2 = vcmp.eq.s32.totalorder %v1720_v41, %v450_v45  ;;  %vm545_vm3 = vcmp.eq.s32.totalorder %v1720_v41, %v453_v54  ;;  %v202_v45 = vsub.f32 %v1318_v13, %v1649_v33 }
 0x13e   :  { %v576_v34 = vsel %vm544_vm2, %v1241_v0, 0.0  ;;  %v577_v48 = vsel %vm545_vm3, %v1253_v2, 0.0  ;;  %v1011_v0 = vsel %vm96_vm5, 1.0, %v1206_v44  ;;  %v203_v2 = vsub.f32 %v1313_v12, %v1631_v52 }
 0x13f   :  { %608 = vadd.xlane.f32.xlu0 %v576_v34  ;;  %v246_v53 = vmul.f32 1.442695, %v202_v45  ;;  %v881_v34 = vsel %vm737_vm4, %v1011_v0, 0.0  ;;  %vm101_vm2 = vcmp.ne.s32.totalorder %v1493_v63, 4294967196 }
 0x140   :  { %v459_v49 = vpop.permute.xlu1 %458  ;;  %v456_v54 = vpop.permute.xlu0 %455  ;;  %v882_v26 = vadd.f32 %v881_v34, %v880_v51  ;;  %v248_v39 = vmul.f32 1.442695, %v203_v2  ;;  %v205_v2 = vsub.f32 %v1325_v14, %v1647_v31 }
 0x141   :  { %vm546_vm6 = vcmp.eq.s32.totalorder %v1720_v41, %v456_v54  ;;  %vm547_vm7 = vcmp.eq.s32.totalorder %v1720_v41, %v459_v49  ;;  %v1079_v54 = vpop.eup %1078  ;;  %1084 = vpow2.f32 %v246_v53  ;;  %v250_v53 = vmul.f32 1.442695, %v204_v57 }
 0x142   :  { %v578_v25 = vsel %vm546_vm6, %v1246_v1, 0.0  ;;  %v1012_v1 = vsel %vm97_vm8, 1.0, %v1206_v44  ;;  %v579_v49 = vsel %vm547_vm7, %v1258_v3, 0.0  ;;  %v1081_v0 = vpop.eup %1080  ;;  %v1013_v3 = vsel %vm98_vm10, 1.0, %v1206_v44 }
 0x143   :  { %610 = vadd.xlane.f32.xlu0 %v577_v48  ;;  %612 = vadd.xlane.f32.xlu1 %v578_v25  ;;  %v883_v45 = vsel %vm737_vm4, %v1012_v1, 0.0  ;;  %1086 = vpow2.f32 %v248_v39  ;;  %v885_v34 = vsel %vm737_vm4, %v1013_v3, 0.0  ;;  %v206_v39 = vsub.f32 %v1342_v17, %v1672_v29 }
 0x144   :  { %v462_v56 = vpop.permute.xlu0 %461  ;;  %v465_v48 = vpop.permute.xlu1 %464  ;;  %v884_v51 = vadd.f32 %v883_v45, %v882_v26  ;;  %v252_v26 = vmul.f32 1.442695, %v205_v2  ;;  %1088 = vpow2.f32 %v250_v53  ;;  %vm102_vm6 = vcmp.ne.s32.totalorder %v1510_v36, 4294967196 }
 0x145   :  { %vm548_vm9 = vcmp.eq.s32.totalorder %v1720_v41, %v462_v56  ;;  %vm549_vm11 = vcmp.eq.s32.totalorder %v1720_v41, %v465_v48  ;;  %v254_v2 = vmul.f32 1.442695, %v206_v39 }
 0x146   :  { %v580_v25 = vsel %vm548_vm9, %v1265_v4, 0.0  ;;  %v1014_v4 = vsel %vm99_vm12, 1.0, %v1206_v44  ;;  %v581_v1 = vsel %vm549_vm11, %v1270_v5, 0.0  ;;  %v1015_v5 = vsel %vm100_vm14, 1.0, %v1206_v44 }
 0x147   :  { %304 = vadd.xlane.f32.xlu0 %v1079_v54  ;;  %614 = vadd.xlane.f32.xlu1 %v579_v49  ;;  %v1083_v54 = vpop.eup %1082  ;;  %v886_v49 = vadd.f32 %v885_v34, %v884_v51  ;;  %v887_v48 = vsel %vm737_vm4, %v1014_v4, 0.0  ;;  %1090 = vpow2.f32 %v252_v26  ;;  %v207_v51 = vsub.f32 %v1337_v16, %v1657_v40 }
 0x148   :  { %v468_v56 = vpop.permute.xlu0 %467  ;;  %v471_v57 = vpop.permute.xlu1 %470  ;;  %v889_v53 = vsel %vm737_vm4, %v1015_v5, 0.0  ;;  %v1016_v34 = vsel %vm101_vm2, 1.0, %v1206_v44  ;;  %1092 = vpow2.f32 %v254_v2  ;;  %v209_v5 = vsub.f32 %v1349_v18, %v1670_v47 }
 0x149   :  { %vm550_vm13 = vcmp.eq.s32.totalorder %v1720_v41, %v468_v56  ;;  %vm551_vm15 = vcmp.eq.s32.totalorder %v1720_v41, %v471_v57  ;;  %v256_v4 = vmul.f32 1.442695, %v207_v51  ;;  %v891_v39 = vsel %vm737_vm4, %v1016_v34, 0.0 }
 0x14a   :  { %v582_v3 = vsel %vm550_vm13, %v1282_v7, 0.0  ;;  %v583_v7 = vsel %vm551_vm15, %v1277_v6, 0.0  ;;  %v1017_v6 = vsel %vm102_vm6, 1.0, %v1206_v44  ;;  %vm2274_vm9 = vcmp.ne.s32.totalorder %v1505_v35, 4294967196 }
 0x14b   :  { %306 = vadd.xlane.f32.xlu0 %v1081_v0  ;;  %616 = vadd.xlane.f32.xlu1 %v580_v25  ;;  %v1085_v45 = vpop.eup %1084  ;;  %v888_v25 = vadd.f32 %v887_v48, %v886_v49  ;;  %1094 = vpow2.f32 %v256_v4  ;;  %v1018_v51 = vsel %vm2274_vm9, 1.0, %v1206_v44  ;;  %v210_v34 = vsub.f32 %v1366_v21, %v1682_v43 }
 0x14c   :  { %v474_v0 = vpop.permute.xlu0 %473  ;;  %v477_v49 = vpop.permute.xlu1 %476  ;;  %vm2272_vm13 = vcmp.ne.s32.totalorder %v1522_v38, 4294967196 }
 0x14d   :  { %v1087_v56 = vpop.eup %1086  ;;  %vm552_vm3 = vcmp.eq.s32.totalorder %v1720_v41, %v474_v0  ;;  %vm553_vm7 = vcmp.eq.s32.totalorder %v1720_v41, %v477_v49 }
 0x14e   :  { %v1089_v57 = vpop.eup %1088  ;;  %v584_v48 = vsel %vm552_vm3, %v1294_v9, 0.0  ;;  %v585_v2 = vsel %vm553_vm7, %v1289_v8, 0.0  ;;  %v1019_v8 = vsel %vm2272_vm13, 1.0, %v1206_v44  ;;  %vm2257_vm3 = vcmp.ne.s32.totalorder %v1517_v37, 4294967196 }
 0x14f   :  { %308 = vadd.xlane.f32.xlu0 %v1083_v54  ;;  %618 = vadd.xlane.f32.xlu1 %v581_v1  ;;  %v890_v54 = vadd.f32 %v889_v53, %v888_v25  ;;  %v208_v1 = vsub.f32 %v1354_v19, %v1676_v50 }
 0x150   :  { %v480_v26 = vpop.permute.xlu0 %479 }
 0x151   :  { %v258_v0 = vmul.f32 1.442695, %v208_v1  ;;  %v1091_v25 = vpop.eup %1090  ;;  %vm554_vm11 = vcmp.eq.s32.totalorder %v1720_v41, %v480_v26  ;;  %v211_v26 = vsub.f32 %v1361_v20, %v1674_v30 }
 0x152   :  { %v1093_v4 = vpop.eup %1092  ;;  %v586_v1 = vsel %vm554_vm11, %v1306_v11, 0.0  ;;  %v1020_v11 = vsel %vm2257_vm3, 1.0, %v1206_v44  ;;  %vm2258_vm11 = vcmp.ne.s32.totalorder %v1534_v42, 4294967196 }
 0x153   :  { %310 = vadd.xlane.f32.xlu0 %v1085_v45  ;;  %620 = vadd.xlane.f32.xlu1 %v582_v3  ;;  %v892_v45 = vadd.f32 %v891_v39, %v890_v54  ;;  %v893_v3 = vsel %vm737_vm4, %v1017_v6, 0.0  ;;  %1096 = vpow2.f32 %v258_v0  ;;  %v895_v54 = vsel %vm737_vm4, %v1018_v51, 0.0 }
 0x154   :  { %v486_v9 = vpop.permute.xlu0 %485  ;;  %v262_v39 = vmul.f32 1.442695, %v210_v34  ;;  %v897_v6 = vsel %vm737_vm4, %v1019_v8, 0.0  ;;  %v264_v0 = vmul.f32 1.442695, %v211_v26  ;;  %v899_v51 = vsel %vm737_vm4, %v1020_v11, 0.0 }
 0x155   :  { %v894_v53 = vadd.f32 %v893_v3, %v892_v45  ;;  %vm556_vm7 = vcmp.eq.s32.totalorder %v1720_v41, %v486_v9  ;;  %v212_v3 = vsub.f32 %v1378_v23, %v1688_v46  ;;  %v213_v34 = vsub.f32 %v1373_v22, %v1680_v27 }
 0x156   :  { %v588_v9 = vsel %vm556_vm7, %v1318_v13, 0.0 }
 0x157   :  { %312 = vadd.xlane.f32.xlu0 %v1087_v56  ;;  %622 = vadd.xlane.f32.xlu1 %v583_v7  ;;  %v260_v56 = vmul.f32 1.442695, %v209_v5  ;;  %v483_v7 = vpop.permute.xlu1 %482  ;;  %v896_v49 = vadd.f32 %v895_v54, %v894_v53  ;;  %v2340_v54 = vld [vmem:[#allocation23_spill] sm:$0xff]  ;;  %v268_v26 = vmul.f32 1.442695, %v213_v34 }
 0x158   :  { %vm555_vm15 = vcmp.eq.s32.totalorder %v1720_v41, %v483_v7  ;;  %v266_v7 = vmul.f32 1.442695, %v212_v3  ;;  %vm2259_vm3 = vcmp.ne.s32.totalorder %v2340_v54, 4294967196  ;;  %v2343_v3 = vld [vmem:[#allocation48_spill] sm:$0xff] }
 0x159   :  { %1098 = vpow2.f32 %v260_v56  ;;  %v587_v45 = vsel %vm555_vm15, %v1301_v10, 0.0  ;;  %v898_v5 = vadd.f32 %v897_v6, %v896_v49  ;;  %v1021_v10 = vsel %vm2258_vm11, 1.0, %v1206_v44 }
 0x15a   :  { %1100 = vpow2.f32 %v262_v39  ;;  %v2341_v39 = vld [vmem:[#allocation9_spill] sm:$0xff] }
 0x15b   :  { %314 = vadd.xlane.f32.xlu0 %v1089_v57  ;;  %624 = vadd.xlane.f32.xlu1 %v584_v48  ;;  %v492_v57 = vpop.permute.xlu0 %491  ;;  %v1095_v48 = vpop.eup %1094  ;;  %v900_v56 = vadd.f32 %v899_v51, %v898_v5  ;;  %1102 = vpow2.f32 %v264_v0  ;;  %v214_v6 = vsub.f32 %v2341_v39, %v1692_v55 }
 0x15c   :  { %vm558_vm7 = vcmp.eq.s32.totalorder %v1720_v41, %v492_v57  ;;  %1104 = vpow2.f32 %v266_v7 }
 0x15d   :  { %v590_v57 = vsel %vm558_vm7, %v1330_v15, 0.0  ;;  %1106 = vpow2.f32 %v268_v26  ;;  %v2348_v26 = vld [vmem:[#allocation24_spill] sm:$0xff] }
 0x15f   :  { %316 = vadd.xlane.f32.xlu0 %v1091_v25  ;;  %626 = vadd.xlane.f32.xlu1 %v585_v2  ;;  %v489_v25 = vpop.permute.xlu1 %488  ;;  %v1097_v2 = vpop.eup %1096 }
 0x160   :  { %v495_v53 = vpop.permute.xlu0 %494  ;;  %vm557_vm15 = vcmp.eq.s32.totalorder %v1720_v41, %v489_v25  ;;  %v2344_v25 = vld [vmem:[#allocation8_spill] sm:$0xff] }
 0x161   :  { %v589_v13 = vsel %vm557_vm15, %v1313_v12, 0.0  ;;  %vm559_vm15 = vcmp.eq.s32.totalorder %v1720_v41, %v495_v53  ;;  %v215_v51 = vsub.f32 %v2344_v25, %v2343_v3 }
 0x162   :  { %v591_v53 = vsel %vm559_vm15, %v1325_v14, 0.0 }
 0x163   :  { %318 = vadd.xlane.f32.xlu0 %v1093_v4  ;;  %628 = vadd.xlane.f32.xlu1 %v586_v1  ;;  %v901_v4 = vsel %vm737_vm4, %v1021_v10, 0.0  ;;  %v1099_v8 = vpop.eup %1098  ;;  %v1022_v1 = vsel %vm2259_vm3, 1.0, %v1206_v44  ;;  %v498_v10 = vpop.permute.xlu1 %497 }
 0x164   :  { %v902_v49 = vadd.f32 %v901_v4, %v900_v56  ;;  %v903_v11 = vsel %vm737_vm4, %v1022_v1, 0.0  ;;  %v1101_v5 = vpop.eup %1100  ;;  %v2345_v56 = vld [vmem:[#allocation27_spill] sm:$0xff]  ;;  %vm560_vm7 = vcmp.eq.s32.totalorder %v1720_v41, %v498_v10  ;;  %v2346_v1 = vld [vmem:[#allocation52_spill] sm:$0xff] }
 0x165   :  { %vm2261_vm3 = vcmp.ne.s32.totalorder %v2345_v56, 4294967196  ;;  %v1103_v34 = vpop.eup %1102  ;;  %v592_v14 = vsel %vm560_vm7, %v1342_v17, 0.0 }
 0x166   :  { %v904_v0 = vadd.f32 %v903_v11, %v902_v49  ;;  %v1024_v15 = vsel %vm2261_vm3, 1.0, %v1206_v44  ;;  %v1105_v11 = vpop.eup %1104 }
 0x167   :  { %320 = vadd.xlane.f32.xlu0 %v1095_v48  ;;  %630 = vadd.xlane.f32.xlu1 %v587_v45  ;;  %v501_v48 = vpop.permute.xlu0 %500  ;;  %v2342_v45 = vld [vmem:[#allocation25_spill] sm:$0xff] }
 0x168   :  { %vm2260_vm11 = vcmp.ne.s32.totalorder %v2342_v45, 4294967196  ;;  %vm561_vm15 = vcmp.eq.s32.totalorder %v1720_v41, %v501_v48 }
 0x169   :  { %v1023_v12 = vsel %vm2260_vm11, 1.0, %v1206_v44  ;;  %vm2262_vm11 = vcmp.ne.s32.totalorder %v2348_v26, 4294967196  ;;  %v593_v48 = vsel %vm561_vm15, %v1337_v16, 0.0 }
 0x16b   :  { %322 = vadd.xlane.f32.xlu0 %v1097_v2  ;;  %632 = vadd.xlane.f32.xlu1 %v588_v9  ;;  %v270_v2 = vmul.f32 1.442695, %v214_v6  ;;  %v905_v9 = vsel %vm737_vm4, %v1023_v12, 0.0  ;;  %v504_v7 = vpop.permute.xlu0 %503  ;;  %v907_v6 = vsel %vm737_vm4, %v1024_v15, 0.0  ;;  %v1107_v15 = vpop.eup %1106 }
 0x16c   :  { %v906_v4 = vadd.f32 %v905_v9, %v904_v0  ;;  %v2350_v0 = vld [vmem:[#allocation10_spill] sm:$0xff]  ;;  %vm562_vm7 = vcmp.eq.s32.totalorder %v1720_v41, %v504_v7 }
 0x16d   :  { %1108 = vpow2.f32 %v270_v2  ;;  %v594_v16 = vsel %vm562_vm7, %v1354_v19, 0.0 }
 0x16e   :  { %v908_v12 = vadd.f32 %v907_v6, %v906_v4 }
 0x16f   :  { %324 = vadd.xlane.f32.xlu0 %v1099_v8  ;;  %634 = vadd.xlane.f32.xlu1 %v589_v13  ;;  %v272_v8 = vmul.f32 1.442695, %v215_v51  ;;  %v2347_v13 = vld [vmem:[#allocation11_spill] sm:$0xff]  ;;  %v507_v10 = vpop.permute.xlu0 %506 }
 0x170   :  { %v216_v49 = vsub.f32 %v2347_v13, %v2346_v1  ;;  %vm563_vm15 = vcmp.eq.s32.totalorder %v1720_v41, %v507_v10 }
 0x171   :  { %1110 = vpow2.f32 %v272_v8  ;;  %v2352_v8 = vld [vmem:[#allocation54_spill] sm:$0xff] }
 0x172   :  { %v274_v2 = vmul.f32 1.442695, %v216_v49  ;;  %v2353_v49 = vld [vmem:[#allocation13_spill] sm:$0xff] }
 0x173   :  { %326 = vadd.xlane.f32.xlu0 %v1101_v5  ;;  %636 = vadd.xlane.f32.xlu1 %v590_v57  ;;  %v1025_v5 = vsel %vm2262_vm11, 1.0, %v1206_v44  ;;  %v2349_v57 = vld [vmem:[#allocation49_spill] sm:$0xff]  ;;  %v218_v6 = vsub.f32 %v2353_v49, %v2352_v8  ;;  %v510_v7 = vpop.permute.xlu0 %509  ;;  %v595_v8 = vsel %vm563_vm15, %v1349_v18, 0.0 }
 0x174   :  { %v217_v51 = vsub.f32 %v2350_v0, %v2349_v57  ;;  %v909_v9 = vsel %vm737_vm4, %v1025_v5, 0.0  ;;  %1112 = vpow2.f32 %v274_v2  ;;  %v2354_v5 = vld [vmem:[#allocation32_spill] sm:$0xff]  ;;  %vm564_vm7 = vcmp.eq.s32.totalorder %v1720_v41, %v510_v7  ;;  %v2361_v7 = vld [vmem:[#allocation53_spill] sm:$0xff] }
 0x175   :  { %vm2264_vm11 = vcmp.ne.s32.totalorder %v2354_v5, 4294967196  ;;  %v2356_v2 = vld [vmem:[#allocation12_spill] sm:$0xff] }
 0x176   :  { %v276_v4 = vmul.f32 1.442695, %v217_v51  ;;  %v1027_v57 = vsel %vm2264_vm11, 1.0, %v1206_v44  ;;  %v2355_v51 = vld [vmem:[#allocation51_spill] sm:$0xff] }
 0x177   :  { %328 = vadd.xlane.f32.xlu0 %v1103_v34  ;;  %638 = vadd.xlane.f32.xlu1 %v591_v53  ;;  %v2351_v34 = vld [vmem:[#allocation29_spill] sm:$0xff]  ;;  %v910_v53 = vadd.f32 %v909_v9, %v908_v12  ;;  %v219_v9 = vsub.f32 %v2356_v2, %v2355_v51  ;;  %v2360_v51 = vld [vmem:[#allocation38_spill] sm:$0xff] }
 0x178   :  { %vm2263_vm3 = vcmp.ne.s32.totalorder %v2351_v34, 4294967196  ;;  %1114 = vpow2.f32 %v276_v4  ;;  %v2358_v4 = vld [vmem:[#allocation56_spill] sm:$0xff]  ;;  %vm2267_vm11 = vcmp.ne.s32.totalorder %v2360_v51, 4294967196 }
 0x179   :  { %v1026_v17 = vsel %vm2263_vm3, 1.0, %v1206_v44  ;;  %v1029_v18 = vsel %vm2267_vm11, 1.0, %v1206_v44 }
 0x17b   :  { %330 = vadd.xlane.f32.xlu0 %v1105_v11  ;;  %640 = vadd.xlane.f32.xlu1 %v592_v14  ;;  %v911_v11 = vsel %vm737_vm4, %v1026_v17, 0.0  ;;  %v1109_v14 = vpop.eup %1108  ;;  %v913_v17 = vsel %vm737_vm4, %v1027_v57, 0.0  ;;  %v513_v57 = vpop.permute.xlu1 %512 }
 0x17c   :  { %v912_v12 = vadd.f32 %v911_v11, %v910_v53  ;;  %v1111_v3 = vpop.eup %1110  ;;  %v280_v53 = vmul.f32 1.442695, %v219_v9  ;;  %vm565_vm15 = vcmp.eq.s32.totalorder %v1720_v41, %v513_v57 }
 0x17e   :  { %v914_v10 = vadd.f32 %v913_v17, %v912_v12  ;;  %v1113_v1 = vpop.eup %1112  ;;  %v2362_v12 = vld [vmem:[#allocation14_spill] sm:$0xff] }
 0x17f   :  { %332 = vadd.xlane.f32.xlu0 %v1107_v15  ;;  %642 = vadd.xlane.f32.xlu1 %v593_v48  ;;  %v278_v15 = vmul.f32 1.442695, %v218_v6  ;;  %v2357_v48 = vld [vmem:[#allocation36_spill] sm:$0xff]  ;;  %v2359_v6 = vld [vmem:[#allocation15_spill] sm:$0xff]  ;;  %v221_v9 = vsub.f32 %v2362_v12, %v2361_v7  ;;  %v2363_v17 = vld [vmem:[#allocation26_spill] sm:$0xff] }
 0x180   :  { %vm2265_vm3 = vcmp.ne.s32.totalorder %v2357_v48, 4294967196  ;;  %v220_v11 = vsub.f32 %v2359_v6, %v2358_v4 }
 0x181   :  { %v1028_v19 = vsel %vm2265_vm3, 1.0, %v1206_v44  ;;  %1116 = vpow2.f32 %v278_v15  ;;  %vm2268_vm3 = vcmp.ne.s32.totalorder %v2363_v17, 4294967196 }
 0x182   :  { %1118 = vpow2.f32 %v280_v53  ;;  %v282_v15 = vmul.f32 1.442695, %v220_v11  ;;  %v1115_v4 = vpop.eup %1114  ;;  %v1030_v55 = vsel %vm2268_vm3, 1.0, %v1206_v44  ;;  %v519_v53 = vpop.permute.xlu1 %518 }
 0x183   :  { %334 = vadd.xlane.f32.xlu0 %v1109_v14  ;;  %644 = vadd.xlane.f32.xlu1 %v594_v16  ;;  %v516_v14 = vpop.permute.xlu0 %515  ;;  %v915_v16 = vsel %vm737_vm4, %v1028_v19, 0.0  ;;  %v917_v19 = vsel %vm737_vm4, %v1029_v18, 0.0  ;;  %v919_v11 = vsel %vm737_vm4, %v1030_v55, 0.0 }
 0x184   :  { %1120 = vpow2.f32 %v282_v15 }
 0x187   :  { %336 = vadd.xlane.f32.xlu0 %v1111_v3  ;;  %646 = vadd.xlane.f32.xlu1 %v595_v8  ;;  %v596_v3 = vsel %vm564_vm7, %v1366_v21, 0.0  ;;  %v916_v8 = vadd.f32 %v915_v16, %v914_v10  ;;  %v597_v21 = vsel %vm565_vm15, %v1361_v20, 0.0  ;;  %v522_v57 = vpop.permute.xlu0 %521  ;;  %vm566_vm7 = vcmp.eq.s32.totalorder %v1720_v41, %v516_v14  ;;  %v2364_v16 = vld [vmem:[#allocation42_spill] sm:$0xff] }
 0x188   :  { %v284_v10 = vmul.f32 1.442695, %v221_v9  ;;  %vm2269_vm11 = vcmp.ne.s32.totalorder %v2364_v16, 4294967196  ;;  %v598_v20 = vsel %vm566_vm7, %v1378_v23, 0.0  ;;  %vm567_vm15 = vcmp.eq.s32.totalorder %v1720_v41, %v519_v53  ;;  %v2366_v23 = vld [vmem:[#allocation44_spill] sm:$0xff] }
 0x189   :  { %v599_v15 = vsel %vm567_vm15, %v1373_v22, 0.0  ;;  %vm2271_vm7 = vcmp.ne.s32.totalorder %v2366_v23, 4294967196 }
 0x18a   :  { %1122 = vpow2.f32 %v284_v10  ;;  %v1033_v53 = vsel %vm2271_vm7, 1.0, %v1206_v44 }
 0x18b   :  { %338 = vadd.xlane.f32.xlu0 %v1113_v1  ;;  %648 = vadd.xlane.f32.xlu1 %v596_v3  ;;  %v918_v1 = vadd.f32 %v917_v19, %v916_v8  ;;  %v1117_v18 = vpop.eup %1116  ;;  %v1031_v3 = vsel %vm2269_vm11, 1.0, %v1206_v44  ;;  %v528_v14 = vpop.permute.xlu0 %527  ;;  %v2365_v8 = vld [vmem:[#allocation28_spill] sm:$0xff]  ;;  %vm568_vm11 = vcmp.eq.s32.totalorder %v1720_v41, %v522_v57 }
 0x18c   :  { %vm2270_vm3 = vcmp.ne.s32.totalorder %v2365_v8, 4294967196  ;;  %v921_v55 = vsel %vm737_vm4, %v1031_v3, 0.0  ;;  %v1119_v12 = vpop.eup %1118  ;;  %v525_v19 = vpop.permute.xlu1 %524  ;;  %v2367_v3 = vld [vmem:[#allocation31_spill] sm:$0xff] }
 0x18d   :  { %v1032_v9 = vsel %vm2270_vm3, 1.0, %v1206_v44  ;;  %vm2273_vm15 = vcmp.ne.s32.totalorder %v2367_v3, 4294967196  ;;  %vm570_vm3 = vcmp.eq.s32.totalorder %v1720_v41, %v528_v14  ;;  %vm569_vm7 = vcmp.eq.s32.totalorder %v1720_v41, %v525_v19 }
 0x18e   :  { %v1121_v10 = vpop.eup %1120 }
 0x18f   :  { %340 = vadd.xlane.f32.xlu0 %v1115_v4  ;;  %650 = vadd.xlane.f32.xlu1 %v597_v21  ;;  %v920_v4 = vadd.f32 %v919_v11, %v918_v1  ;;  %v923_v1 = vsel %vm737_vm4, %v1032_v9, 0.0  ;;  %v600_v11 = vsel %vm568_vm11, %v2341_v39, 0.0  ;;  %v2368_v9 = vld [vmem:[#allocation45_spill] sm:$0xff] }
 0x190   :  { %v534_v57 = vpop.permute.xlu1 %533  ;;  %vm120_vm11 = vcmp.ne.s32.totalorder %v2368_v9, 4294967196 }
 0x191   :  { %v922_v21 = vadd.f32 %v921_v55, %v920_v4  ;;  %v1034_v55 = vsel %vm2273_vm15, 1.0, %v1206_v44  ;;  %vm572_vm13 = vcmp.eq.s32.totalorder %v1720_v41, %v534_v57  ;;  %v2370_v57 = vld [vmem:[#allocation35_spill] sm:$0xff] }
 0x193   :  { %342 = vadd.xlane.f32.xlu0 %v1117_v18  ;;  %652 = vadd.xlane.f32.xlu1 %v598_v20  ;;  %v531_v18 = vpop.permute.xlu0 %530  ;;  %v924_v22 = vadd.f32 %v923_v1, %v922_v21  ;;  %v925_v20 = vsel %vm737_vm4, %v1033_v53, 0.0  ;;  %v1035_v21 = vsel %vm120_vm11, 1.0, %v1206_v44  ;;  %v601_v1 = vsel %vm569_vm7, %v2344_v25, 0.0  ;;  %v2369_v53 = vld [vmem:[#allocation46_spill] sm:$0xff] }
 0x194   :  { %v1123_v4 = vpop.eup %1122  ;;  %vm571_vm15 = vcmp.eq.s32.totalorder %v1720_v41, %v531_v18 }
 0x195   :  { %v926_v39 = vadd.f32 %v925_v20, %v924_v22  ;;  %v603_v25 = vsel %vm571_vm15, %v2350_v0, 0.0 }
 0x197   :  { %344 = vadd.xlane.f32.xlu0 %v1119_v12  ;;  %654 = vadd.xlane.f32.xlu1 %v599_v15  ;;  %v602_v12 = vsel %vm570_vm3, %v2347_v13, 0.0  ;;  %v540_v14 = vpop.permute.xlu0 %539  ;;  %v927_v15 = vsel %vm737_vm4, %v1034_v55, 0.0  ;;  %v604_v13 = vsel %vm572_vm13, %v2353_v49, 0.0  ;;  %vm2275_vm3 = vcmp.ne.s32.totalorder %v2369_v53, 4294967196 }
 0x198   :  { %vm574_vm9 = vcmp.eq.s32.totalorder %v1720_v41, %v540_v14  ;;  %v928_v19 = vadd.f32 %v927_v15, %v926_v39  ;;  %v1036_v22 = vsel %vm2275_vm3, 1.0, %v1206_v44  ;;  %vm122_vm13 = vcmp.ne.s32.totalorder %v2370_v57, 4294967196  ;;  %v2371_v39 = vld [vmem:[#allocation37_spill] sm:$0xff]  ;;  %v1192_v15 = vld [vmem:[%s2179_s1 + $0xf8] sm:$0xff] }
 0x199   :  { %v606_v49 = vsel %vm574_vm9, %v2359_v6, 0.0  ;;  %v1037_v55 = vsel %vm122_vm13, 1.0, %v1206_v44  ;;  %vm123_vm15 = vcmp.ne.s32.totalorder %v2371_v39, 4294967196 }
 0x19a   :  { %v933_v6 = vsel %vm737_vm4, %v1037_v55, 0.0  ;;  %v1038_v14 = vsel %vm123_vm15, 1.0, %v1206_v44  ;;  %v2376_v55 = vld [vmem:[#allocation58_spill] sm:$0xff] }
 0x19b   :  { %346 = vadd.xlane.f32.xlu0 %v1121_v10  ;;  %656 = vadd.xlane.f32.xlu1 %v600_v11  ;;  %v537_v10 = vpop.permute.xlu1 %536  ;;  %v929_v11 = vsel %vm737_vm4, %v1035_v21, 0.0 }
 0x19c   :  { %vm573_vm7 = vcmp.eq.s32.totalorder %v1720_v41, %v537_v10  ;;  %v930_v18 = vadd.f32 %v929_v11, %v928_v19  ;;  %v2373_v10 = vld [vmem:[#allocation41_spill] sm:$0xff] }
 0x19f   :  { %348 = vadd.xlane.f32.xlu0 %v1123_v4  ;;  %660 = vadd.xlane.f32.xlu1 %v602_v12  ;;  %v543_v20 = vpop.permute.xlu1 %542  ;;  %v931_v4 = vsel %vm737_vm4, %v1036_v22, 0.0  ;;  %v605_v12 = vsel %vm573_vm7, %v2356_v2, 0.0  ;;  %vm125_vm7 = vcmp.ne.s32.totalorder %v2373_v10, 4294967196 }
 0x1a0   :  { %vm575_vm9 = vcmp.eq.s32.totalorder %v1720_v41, %v543_v20  ;;  %v932_v0 = vadd.f32 %v931_v4, %v930_v18  ;;  %v1040_v22 = vsel %vm125_vm7, 1.0, %v1206_v44  ;;  %v2374_v18 = vld [vmem:[#allocation55_spill] sm:$0xff]  ;;  %v2375_v4 = vld [vmem:[#allocation57_spill] sm:$0xff] }
 0x1a1   :  { %v607_v21 = vsel %vm575_vm9, %v1192_v15, 0.0  ;;  %1124 = vlog2.f32 %v2374_v18  ;;  %vm2401_vm9 = vcmp.ne.s32.totalorder %v2354_v5, 4294967196 }
 0x1a2   :  { %v934_v2 = vadd.f32 %v933_v6, %v932_v0  ;;  %1126 = vlog2.f32 %v2375_v4  ;;  %v2377_v6 = vld [vmem:[#allocation59_spill] sm:$0xff]  ;;  %v2381_v4 = vld [vmem:[#allocation18_spill] sm:$0xff] }
 0x1a3   :  { %658 = vadd.xlane.f32.xlu0 %v601_v1  ;;  %664 = vadd.xlane.f32.xlu1 %v604_v13  ;;  %v2372_v1 = vld [vmem:[#allocation47_spill] sm:$0xff]  ;;  %v935_v13 = vsel %vm737_vm4, %v1038_v14, 0.0  ;;  %1128 = vlog2.f32 %v2376_v55 }
 0x1a4   :  { %vm124_vm3 = vcmp.ne.s32.totalorder %v2372_v1, 4294967196  ;;  %v936_v19 = vadd.f32 %v935_v13, %v934_v2  ;;  %1130 = vlog2.f32 %v1716_v28  ;;  %v2378_v2 = vld [vmem:[#allocation60_spill] sm:$0xff] }
 0x1a5   :  { %v1039_v41 = vsel %vm124_vm3, 1.0, %v1206_v44  ;;  %1132 = vlog2.f32 %v2377_v6 }
 0x1a6   :  { %v937_v11 = vsel %vm737_vm4, %v1039_v41, 0.0  ;;  %1134 = vlog2.f32 %v2378_v2  ;;  %v2379_v41 = vld [vmem:[#allocation16_spill] sm:$0xff] }
 0x1a7   :  { %662 = vadd.xlane.f32.xlu0 %v603_v25  ;;  %668 = vadd.xlane.f32.xlu1 %v606_v49  ;;  %v938_v25 = vadd.f32 %v937_v11, %v936_v19  ;;  %v939_v49 = vsel %vm737_vm4, %v1040_v22, 0.0 }
 0x1a9   :  { %v940_v20 = vadd.f32 %v939_v49, %v938_v25  ;;  %v301_v25 = vpop.xlane.xlu1 %300 }
 0x1ab   :  { %666 = vadd.xlane.f32.xlu0 %v605_v12  ;;  %v1125_v0 = vpop.eup %1124 }
 0x1ac   :  { %v1127_v14 = vpop.eup %1126  ;;  %v351_v15 = vmul.f32 0.6931472, %v1125_v0 }
 0x1ad   :  { %v299_v12 = vpop.xlane.xlu0 %298  ;;  %v1129_v44 = vpop.eup %1128  ;;  %v355_v13 = vmul.f32 0.6931472, %v1127_v14 }
 0x1ae   :  { %v414_v19 = vadd.f32 %v351_v15, %v2379_v41  ;;  %v353_v11 = vmul.f32 0.6931472, %v1129_v44  ;;  %v1131_v22 = vpop.eup %1130  ;;  %v2383_v41 = vld [vmem:[#allocation19_spill] sm:$0xff]  ;;  %1136 = vlog2.f32 %v299_v12 }
 0x1af   :  { %670 = vadd.xlane.f32.xlu0 %v607_v21  ;;  %v357_v10 = vmul.f32 0.6931472, %v1131_v22  ;;  %v1133_v6 = vpop.eup %1132  ;;  %1138 = vlog2.f32 %v301_v25 }
 0x1b0   :  { %v415_v55 = vadd.f32 %v353_v11, %v2381_v4  ;;  %v359_v53 = vmul.f32 0.6931472, %v1133_v6 }
 0x1b1   :  { %v303_v21 = vpop.xlane.xlu0 %302 }
 0x1b2   :  { %1140 = vlog2.f32 %v303_v21  ;;  %v2386_v21 = vld [vmem:[#allocation34_spill] sm:$0xff] }
 0x1b3   :  { %941 = vadd.xlane.f32.xlu0 %v940_v20  ;;  %v2380_v20 = vld [vmem:[#allocation17_spill] sm:$0xff] }
 0x1b4   :  { %v416_v28 = vadd.f32 %v355_v13, %v2380_v20  ;;  %v417_v13 = vadd.f32 %v357_v10, %v2383_v41 }
 0x1cc   :  { %v609_v49 = vpop.xlane.xlu0 %608 }
 0x1cd   :  { %v672_v18 = vsub.f32 %v414_v19, %v609_v49  ;;  %v1135_v19 = vpop.eup %1134 }
 0x1cf   :  { %v704_v7 = vsel %vm94_vm0, %v672_v18, 0.0  ;;  %vm2392_vm0 = vcmp.ne.s32.totalorder %v1505_v35, 4294967196 }
 0x1d0   :  { %v613_v39 = vpop.xlane.xlu1 %612  ;;  %v611_v0 = vpop.xlane.xlu0 %610  ;;  %v738_v11 = vsel %vm737_vm4, %v704_v7, 0.0 }
 0x1d1   :  { %v674_v2 = vsub.f32 %v416_v28, %v613_v39  ;;  %v673_v14 = vsub.f32 %v415_v55, %v611_v0  ;;  %v361_v28 = vmul.f32 0.6931472, %v1135_v19  ;;  %v418_v55 = vadd.f32 %v359_v53, %v2384_v58 }
 0x1d3   :  { %v706_v15 = vsel %vm96_vm5, %v674_v2, 0.0  ;;  %v705_v44 = vsel %vm95_vm1, %v673_v14, 0.0  ;;  %vm2393_vm1 = vcmp.ne.s32.totalorder %v1522_v38, 4294967196  ;;  %vm2394_vm5 = vcmp.ne.s32.totalorder %v1517_v37, 4294967196 }
 0x1d4   :  { %v739_v22 = vsel %vm737_vm4, %v705_v44, 0.0  ;;  %v615_v49 = vpop.xlane.xlu1 %614  ;;  %v305_v20 = vpop.xlane.xlu0 %304  ;;  %v741_v39 = vsel %vm737_vm4, %v706_v15, 0.0  ;;  %v2385_v44 = vld [vmem:[#allocation21_spill] sm:$0xff] }
 0x1d5   :  { %v740_v1 = vadd.f32 %v739_v22, %v738_v11  ;;  %v675_v18 = vsub.f32 %v417_v13, %v615_v49  ;;  %v419_v41 = vadd.f32 %v361_v28, %v2385_v44  ;;  %1142 = vlog2.f32 %v305_v20 }
 0x1d7   :  { %v707_v60 = vsel %vm97_vm8, %v675_v18, 0.0  ;;  %v742_v4 = vadd.f32 %v741_v39, %v740_v1  ;;  %vm2395_vm8 = vcmp.ne.s32.totalorder %v1534_v42, 4294967196 }
 0x1d8   :  { %v743_v10 = vsel %vm737_vm4, %v707_v60, 0.0  ;;  %v617_v6 = vpop.xlane.xlu1 %616  ;;  %v307_v0 = vpop.xlane.xlu0 %306 }
 0x1d9   :  { %v676_v7 = vsub.f32 %v418_v55, %v617_v6  ;;  %v744_v2 = vadd.f32 %v743_v10, %v742_v4  ;;  %1144 = vlog2.f32 %v307_v0 }
 0x1db   :  { %v708_v14 = vsel %vm98_vm10, %v676_v7, 0.0  ;;  %v1137_v7 = vpop.eup %1136  ;;  %vm2396_vm10 = vcmp.ne.s32.totalorder %v2340_v54, 4294967196 }
 0x1dc   :  { %v745_v15 = vsel %vm737_vm4, %v708_v14, 0.0  ;;  %v619_v13 = vpop.xlane.xlu1 %618  ;;  %v309_v19 = vpop.xlane.xlu0 %308  ;;  %v363_v44 = vmul.f32 0.6931472, %v1137_v7  ;;  %v2387_v7 = vld [vmem:[#allocation30_spill] sm:$0xff] }
 0x1dd   :  { %v746_v59 = vadd.f32 %v745_v15, %v744_v2  ;;  %v677_v11 = vsub.f32 %v419_v41, %v619_v13  ;;  %1146 = vlog2.f32 %v309_v19  ;;  %v1139_v41 = vpop.eup %1138 }
 0x1de   :  { %v1141_v13 = vpop.eup %1140  ;;  %v365_v25 = vmul.f32 0.6931472, %v1139_v41 }
 0x1df   :  { %v709_v53 = vsel %vm99_vm12, %v677_v11, 0.0  ;;  %v1143_v11 = vpop.eup %1142  ;;  %vm2397_vm12 = vcmp.ne.s32.totalorder %v2342_v45, 4294967196 }
 0x1e0   :  { %v747_v22 = vsel %vm737_vm4, %v709_v53, 0.0  ;;  %v621_v49 = vpop.xlane.xlu1 %620  ;;  %v311_v1 = vpop.xlane.xlu0 %310  ;;  %v369_v19 = vmul.f32 0.6931472, %v1143_v11  ;;  %v2390_v11 = vld [vmem:[#allocation43_spill] sm:$0xff] }
 0x1e1   :  { %v2020_v18 = vadd.f32 %v747_v22, %v746_v59  ;;  %1148 = vlog2.f32 %v311_v1  ;;  %v420_v59 = vadd.f32 %v363_v44, %v2386_v21  ;;  %v367_v22 = vmul.f32 0.6931472, %v1141_v13 }
 0x1e2   :  { %v421_v1 = vadd.f32 %v365_v25, %v2387_v7 }
 0x1e3   :  { %v1145_v53 = vpop.eup %1144  ;;  %v678_v57 = vsub.f32 %v420_v59, %v621_v49 }
 0x1e4   :  { %v623_v39 = vpop.xlane.xlu1 %622  ;;  %v313_v62 = vpop.xlane.xlu0 %312  ;;  %v371_v9 = vmul.f32 0.6931472, %v1145_v53 }
 0x1e5   :  { %1150 = vlog2.f32 %v313_v62  ;;  %v710_v44 = vsel %vm100_vm14, %v678_v57, 0.0  ;;  %v679_v41 = vsub.f32 %v421_v1, %v623_v39  ;;  %vm2398_vm14 = vcmp.ne.s32.totalorder %v2345_v56, 4294967196 }
 0x1e6   :  { %v749_v25 = vsel %vm737_vm4, %v710_v44, 0.0  ;;  %v424_v53 = vadd.f32 %v371_v9, %v2390_v11 }
 0x1e7   :  { %v1147_v3 = vpop.eup %1146  ;;  %v711_v57 = vsel %vm101_vm2, %v679_v41, 0.0  ;;  %v750_v1 = vadd.f32 %v749_v25, %v2020_v18  ;;  %vm2399_vm2 = vcmp.ne.s32.totalorder %v2348_v26, 4294967196 }
 0x1e8   :  { %v625_v60 = vpop.xlane.xlu1 %624  ;;  %v315_v4 = vpop.xlane.xlu0 %314  ;;  %v373_v13 = vmul.f32 0.6931472, %v1147_v3 }
 0x1e9   :  { %1152 = vlog2.f32 %v315_v4  ;;  %v2388_v4 = vld [vmem:[#allocation40_spill] sm:$0xff] }
 0x1ea   :  { %v422_v21 = vadd.f32 %v367_v22, %v2388_v4 }
 0x1eb   :  { %v1149_v8 = vpop.eup %1148 }
 0x1ec   :  { %v2022_v28 = vpop.xlane.xlu1 %626  ;;  %v317_v58 = vpop.xlane.xlu0 %316  ;;  %v680_v49 = vsub.f32 %v422_v21, %v625_v60  ;;  %v375_v24 = vmul.f32 0.6931472, %v1149_v8  ;;  %v751_v8 = vsel %vm737_vm4, %v711_v57, 0.0 }
 0x1ed   :  { %1154 = vlog2.f32 %v317_v58  ;;  %v2389_v58 = vld [vmem:[#allocation33_spill] sm:$0xff]  ;;  %v752_v4 = vadd.f32 %v751_v8, %v750_v1 }
 0x1ee   :  { %v423_v59 = vadd.f32 %v369_v19, %v2389_v58  ;;  %v2391_v19 = vld [vmem:[#allocation39_spill] sm:$0xff]  ;;  %v426_v44 = vadd.f32 %v375_v24, %v1649_v33 }
 0x1ef   :  { %v1151_v16 = vpop.eup %1150  ;;  %v425_v9 = vadd.f32 %v373_v13, %v2391_v19 }
 0x1f0   :  { %v2024_v55 = vpop.xlane.xlu1 %628  ;;  %v319_v10 = vpop.xlane.xlu0 %318  ;;  %v681_v39 = vsub.f32 %v423_v59, %v2022_v28  ;;  %v377_v3 = vmul.f32 0.6931472, %v1151_v16 }
 0x1f1   :  { %1156 = vlog2.f32 %v319_v10  ;;  %v682_v22 = vsub.f32 %v424_v53, %v2024_v55 }
 0x1f2   :  { %v713_v16 = vsel %vm2392_vm0, %v681_v39, 0.0  ;;  %vm2402_vm0 = vcmp.ne.s32.totalorder %v2357_v48, 4294967196 }
 0x1f3   :  { %v1153_v10 = vpop.eup %1152  ;;  %v755_v35 = vsel %vm737_vm4, %v713_v16, 0.0 }
 0x1f4   :  { %v2026_v61 = vpop.xlane.xlu1 %630  ;;  %v321_v6 = vpop.xlane.xlu0 %320 }
 0x1f5   :  { %1158 = vlog2.f32 %v321_v6  ;;  %v712_v6 = vsel %vm102_vm6, %v680_v49, 0.0  ;;  %v683_v36 = vsub.f32 %v425_v9, %v2026_v61  ;;  %vm2400_vm6 = vcmp.ne.s32.totalorder %v2351_v34, 4294967196 }
 0x1f6   :  { %v753_v55 = vsel %vm737_vm4, %v712_v6, 0.0 }
 0x1f7   :  { %v1155_v60 = vpop.eup %1154  ;;  %v754_v58 = vadd.f32 %v753_v55, %v752_v4 }
 0x1f8   :  { %v2028_v2 = vpop.xlane.xlu1 %632  ;;  %v323_v14 = vpop.xlane.xlu0 %322  ;;  %v381_v41 = vmul.f32 0.6931472, %v1155_v60 }
 0x1f9   :  { %1160 = vlog2.f32 %v323_v14  ;;  %v379_v14 = vmul.f32 0.6931472, %v1153_v10  ;;  %v684_v21 = vsub.f32 %v426_v44, %v2028_v2  ;;  %v756_v11 = vadd.f32 %v755_v35, %v754_v58 }
 0x1fa   :  { %v429_v2 = vadd.f32 %v381_v41, %v1647_v31 }
 0x1fb   :  { %v1157_v18 = vpop.eup %1156 }
 0x1fc   :  { %v2030_v15 = vpop.xlane.xlu1 %634  ;;  %v325_v12 = vpop.xlane.xlu0 %324  ;;  %v383_v59 = vmul.f32 0.6931472, %v1157_v18 }
 0x1fd   :  { %1162 = vlog2.f32 %v325_v12  ;;  %v427_v12 = vadd.f32 %v377_v3, %v1631_v52  ;;  %v715_v52 = vsel %vm2394_vm5, %v683_v36, 0.0 }
 0x1fe   :  { %v759_v24 = vsel %vm737_vm4, %v715_v52, 0.0  ;;  %v430_v6 = vadd.f32 %v383_v59, %v1672_v29 }
 0x1ff   :  { %v685_v13 = vsub.f32 %v427_v12, %v2030_v15  ;;  %v1159_v49 = vpop.eup %1158  ;;  %v716_v15 = vsel %vm2395_vm8, %v684_v21, 0.0 }
 0x200   :  { %v2033_v20 = vpop.xlane.xlu1 %636  ;;  %v327_v0 = vpop.xlane.xlu0 %326  ;;  %v385_v37 = vmul.f32 0.6931472, %v1159_v49  ;;  %v761_v60 = vsel %vm737_vm4, %v716_v15, 0.0 }
 0x201   :  { %1164 = vlog2.f32 %v327_v0  ;;  %v714_v0 = vsel %vm2393_vm1, %v682_v22, 0.0  ;;  %vm2403_vm1 = vcmp.ne.s32.totalorder %v2360_v51, 4294967196 }
 0x202   :  { %v757_v38 = vsel %vm737_vm4, %v714_v0, 0.0  ;;  %v431_v8 = vadd.f32 %v385_v37, %v1657_v40 }
 0x203   :  { %v1161_v25 = vpop.eup %1160  ;;  %v758_v31 = vadd.f32 %v757_v38, %v756_v11 }
 0x204   :  { %v2036_v23 = vpop.xlane.xlu1 %638  ;;  %v329_v62 = vpop.xlane.xlu0 %328  ;;  %v387_v42 = vmul.f32 0.6931472, %v1161_v25 }
 0x205   :  { %1166 = vlog2.f32 %v329_v62  ;;  %v428_v62 = vadd.f32 %v379_v14, %v1659_v32  ;;  %v717_v32 = vsel %vm2396_vm10, %v685_v13, 0.0 }
 0x206   :  { %v763_v22 = vsel %vm737_vm4, %v717_v32, 0.0  ;;  %v432_v45 = vadd.f32 %v387_v42, %v1676_v50 }
 0x207   :  { %v686_v53 = vsub.f32 %v428_v62, %v2033_v20  ;;  %v1163_v10 = vpop.eup %1162  ;;  %v760_v20 = vadd.f32 %v759_v24, %v758_v31 }
 0x208   :  { %v2044_v7 = vpop.xlane.xlu1 %640  ;;  %v331_v17 = vpop.xlane.xlu0 %330  ;;  %v389_v9 = vmul.f32 0.6931472, %v1163_v10  ;;  %v2404_v10 = vld [vmem:[#allocation26_spill] sm:$0xff] }
 0x209   :  { %1168 = vlog2.f32 %v331_v17  ;;  %v687_v17 = vsub.f32 %v429_v2, %v2036_v23  ;;  %v718_v54 = vsel %vm2397_vm12, %v686_v53, 0.0  ;;  %v688_v1 = vsub.f32 %v430_v6, %v2044_v7 }
 0x20a   :  { %v762_v16 = vadd.f32 %v761_v60, %v760_v20  ;;  %v765_v36 = vsel %vm737_vm4, %v718_v54, 0.0  ;;  %v433_v18 = vadd.f32 %v389_v9, %v1670_v47  ;;  %vm2405_vm5 = vcmp.ne.s32.totalorder %v2404_v10, 4294967196  ;;  %v2406_v60 = vld [vmem:[#allocation50_spill] sm:$0xff] }
 0x20b   :  { %v1165_v3 = vpop.eup %1164  ;;  %v719_v23 = vsel %vm2398_vm14, %v687_v17, 0.0  ;;  %v720_v7 = vsel %vm2399_vm2, %v688_v1, 0.0  ;;  %v2407_v20 = vld [vmem:[#allocation42_spill] sm:$0xff] }
 0x20c   :  { %v2055_v63 = vpop.xlane.xlu1 %642  ;;  %v333_v28 = vpop.xlane.xlu0 %332  ;;  %v391_v29 = vmul.f32 0.6931472, %v1165_v3  ;;  %v764_v41 = vadd.f32 %v763_v22, %v762_v16  ;;  %v767_v12 = vsel %vm737_vm4, %v719_v23, 0.0  ;;  %v769_v26 = vsel %vm737_vm4, %v720_v7, 0.0 }
 0x20d   :  { %1170 = vlog2.f32 %v333_v28  ;;  %v689_v44 = vsub.f32 %v431_v8, %v2055_v63  ;;  %vm2408_vm8 = vcmp.ne.s32.totalorder %v2407_v20, 4294967196 }
 0x20e   :  { %v766_v35 = vadd.f32 %v765_v36, %v764_v41  ;;  %v434_v63 = vadd.f32 %v391_v29, %v1682_v43 }
 0x20f   :  { %v1167_v19 = vpop.eup %1166  ;;  %v721_v13 = vsel %vm2400_vm6, %v689_v44, 0.0 }
 0x210   :  { %v2068_v61 = vpop.xlane.xlu1 %644  ;;  %v335_v33 = vpop.xlane.xlu0 %334  ;;  %v393_v56 = vmul.f32 0.6931472, %v1167_v19  ;;  %v768_v49 = vadd.f32 %v767_v12, %v766_v35  ;;  %v771_v59 = vsel %vm737_vm4, %v721_v13, 0.0  ;;  %v2415_v13 = vld [vmem:[#allocation48_spill] sm:$0xff] }
 0x211   :  { %1172 = vlog2.f32 %v335_v33  ;;  %v690_v40 = vsub.f32 %v432_v45, %v2068_v61 }
 0x212   :  { %v435_v61 = vadd.f32 %v393_v56, %v1674_v30  ;;  %v770_v34 = vadd.f32 %v769_v26, %v768_v49 }
 0x213   :  { %v1169_v55 = vpop.eup %1168  ;;  %v722_v52 = vsel %vm2401_vm9, %v690_v40, 0.0  ;;  %v2413_v40 = vld [vmem:[#allocation52_spill] sm:$0xff] }
 0x214   :  { %v647_v57 = vpop.xlane.xlu1 %646  ;;  %v337_v39 = vpop.xlane.xlu0 %336  ;;  %v395_v50 = vmul.f32 0.6931472, %v1169_v55  ;;  %v773_v30 = vsel %vm737_vm4, %v722_v52, 0.0  ;;  %v772_v53 = vadd.f32 %v771_v59, %v770_v34  ;;  %v2411_v55 = vld [vmem:[#allocation44_spill] sm:$0xff] }
 0x215   :  { %v691_v33 = vsub.f32 %v433_v18, %v647_v57  ;;  %vm2412_vm12 = vcmp.ne.s32.totalorder %v2411_v55, 4294967196 }
 0x216   :  { %v436_v11 = vadd.f32 %v395_v50, %v1688_v46  ;;  %v774_v48 = vadd.f32 %v773_v30, %v772_v53 }
 0x217   :  { %v1171_v21 = vpop.eup %1170  ;;  %v723_v2 = vsel %vm2402_vm0, %v691_v33, 0.0 }
 0x218   :  { %v649_v28 = vpop.xlane.xlu1 %648  ;;  %v339_v14 = vpop.xlane.xlu0 %338  ;;  %v397_v47 = vmul.f32 0.6931472, %v1171_v21  ;;  %v775_v57 = vsel %vm737_vm4, %v723_v2, 0.0 }
 0x219   :  { %1174 = vlog2.f32 %v339_v14  ;;  %v692_v62 = vsub.f32 %v434_v63, %v649_v28  ;;  %v776_v6 = vadd.f32 %v775_v57, %v774_v48  ;;  %v2409_v28 = vld [vmem:[#allocation28_spill] sm:$0xff]  ;;  %v2414_v63 = vld [vmem:[#allocation54_spill] sm:$0xff] }
 0x21a   :  { %1176 = vlog2.f32 %v337_v39  ;;  %v437_v32 = vadd.f32 %v397_v47, %v1680_v27  ;;  %vm2410_vm10 = vcmp.ne.s32.totalorder %v2409_v28, 4294967196  ;;  %v2425_v28 = vld [vmem:[#allocation53_spill] sm:$0xff] }
 0x21b   :  { %v1173_v58 = vpop.eup %1172  ;;  %v724_v5 = vsel %vm2403_vm1, %v692_v62, 0.0  ;;  %v2416_v62 = vld [vmem:[#allocation49_spill] sm:$0xff] }
 0x21c   :  { %v651_v4 = vpop.xlane.xlu1 %650  ;;  %v341_v0 = vpop.xlane.xlu0 %340  ;;  %v399_v15 = vmul.f32 0.6931472, %v1173_v58  ;;  %v777_v3 = vsel %vm737_vm4, %v724_v5, 0.0 }
 0x21d   :  { %1178 = vlog2.f32 %v341_v0  ;;  %v693_v25 = vsub.f32 %v435_v61, %v651_v4  ;;  %v778_v8 = vadd.f32 %v777_v3, %v776_v6  ;;  %v2424_v6 = vld [vmem:[#allocation51_spill] sm:$0xff] }
 0x21e   :  { %v438_v42 = vadd.f32 %v399_v15, %v2406_v60 }
 0x21f   :  { %v725_v31 = vsel %vm2405_vm5, %v693_v25, 0.0 }
 0x220   :  { %v653_v38 = vpop.xlane.xlu1 %652  ;;  %v343_v43 = vpop.xlane.xlu0 %342  ;;  %v779_v9 = vsel %vm737_vm4, %v725_v31, 0.0 }
 0x221   :  { %1180 = vlog2.f32 %v343_v43  ;;  %v694_v24 = vsub.f32 %v436_v11, %v653_v38  ;;  %v780_v44 = vadd.f32 %v779_v9, %v778_v8  ;;  %v2418_v11 = vld [vmem:[#allocation31_spill] sm:$0xff] }
 0x222   :  { %vm2419_vm14 = vcmp.ne.s32.totalorder %v2418_v11, 4294967196 }
 0x223   :  { %v1175_v39 = vpop.eup %1174  ;;  %v726_v22 = vsel %vm2408_vm8, %v694_v24, 0.0 }
 0x224   :  { %v655_v37 = vpop.xlane.xlu1 %654  ;;  %v345_v17 = vpop.xlane.xlu0 %344  ;;  %v403_v19 = vmul.f32 0.6931472, %v1175_v39  ;;  %v781_v36 = vsel %vm737_vm4, %v726_v22, 0.0  ;;  %v2420_v39 = vld [vmem:[#allocation56_spill] sm:$0xff] }
 0x225   :  { %v695_v46 = vsub.f32 %v437_v32, %v655_v37  ;;  %1182 = vlog2.f32 %v345_v17  ;;  %v1177_v51 = vpop.eup %1176  ;;  %v782_v0 = vadd.f32 %v781_v36, %v780_v44  ;;  %v953_v32 = vld [vmem:[%s2181_s3] sm:$0xff] }
 0x226   :  { %v401_v29 = vmul.f32 0.6931472, %v1177_v51  ;;  %v440_v18 = vadd.f32 %v403_v19, %v2413_v40  ;;  %v954_v17 = vld [vmem:[%s2182_s4] sm:$0xff] }
 0x227   :  { %v1179_v1 = vpop.eup %1178  ;;  %v727_v14 = vsel %vm2410_vm10, %v695_v46, 0.0  ;;  %v955_v9 = vsub.f32 %v953_v32, %v954_v17  ;;  %v988_v17 = vstv %s987_s26 }
 0x228   :  { %v657_v27 = vpop.xlane.xlu1 %656  ;;  %v347_v54 = vpop.xlane.xlu0 %346  ;;  %v783_v7 = vsel %vm737_vm4, %v727_v14, 0.0  ;;  %v405_v4 = vmul.f32 0.6931472, %v1179_v1  ;;  %v439_v33 = vadd.f32 %v401_v29, %v2415_v13 }
 0x229   :  { %v696_v23 = vsub.f32 %v438_v42, %v657_v27  ;;  %1184 = vlog2.f32 %v347_v54  ;;  %v784_v26 = vadd.f32 %v783_v7, %v782_v0  ;;  %v2422_v42 = vld [vmem:[#allocation46_spill] sm:$0xff] }
 0x22a   :  { %v441_v38 = vadd.f32 %v405_v4, %v2416_v62 }
 0x22b   :  { %v1181_v16 = vpop.eup %1180  ;;  %v728_v41 = vsel %vm2412_vm12, %v696_v23, 0.0 }
 0x22c   :  { %v407_v45 = vmul.f32 0.6931472, %v1181_v16  ;;  %v661_v12 = vpop.xlane.xlu1 %660  ;;  %v349_v56 = vpop.xlane.xlu0 %348  ;;  %v785_v21 = vsel %vm737_vm4, %v728_v41, 0.0 }
 0x22d   :  { %1186 = vlog2.f32 %v349_v56  ;;  %v698_v35 = vsub.f32 %v440_v18, %v661_v12  ;;  %v786_v52 = vadd.f32 %v785_v21, %v784_v26  ;;  %v956_v12 = vand.u32 2147483647, %v955_v9 }
 0x22e   :  { %v442_v50 = vadd.f32 %v407_v45, %v2414_v63  ;;  %v958_v56 = vmul.f32 0.5, %v955_v9  ;;  %1188 = vrcp.f32 %v988_v17 }
 0x22f   :  { %v1183_v49 = vpop.eup %1182  ;;  %v730_v2 = vsel %vm120_vm11, %v698_v35, 0.0  ;;  %vm2423_vm11 = vcmp.ne.s32.totalorder %v2422_v42, 4294967196 }
 0x230   :  { %v665_v61 = vpop.xlane.xlu1 %664  ;;  %v659_v58 = vpop.xlane.xlu0 %658  ;;  %v409_v59 = vmul.f32 0.6931472, %v1183_v49  ;;  %v789_v57 = vsel %vm737_vm4, %v730_v2, 0.0  ;;  %v959_v63 = vmul.f32 %v958_v56, %v955_v9 }
 0x231   :  { %v697_v47 = vsub.f32 %v439_v33, %v659_v58  ;;  %v700_v25 = vsub.f32 %v442_v50, %v665_v61  ;;  %v1041_v50 = vadd.f32 -0.5, %v956_v12 }
 0x232   :  { %v443_v20 = vadd.f32 %v409_v59, %v2424_v6 }
 0x233   :  { %v1185_v43 = vpop.eup %1184  ;;  %v729_v30 = vsel %vm2419_vm14, %v697_v47, 0.0  ;;  %v732_v46 = vsel %vm122_vm13, %v700_v25, 0.0 }
 0x234   :  { %v411_v15 = vmul.f32 0.6931472, %v1185_v43  ;;  %v787_v53 = vsel %vm737_vm4, %v729_v30, 0.0  ;;  %v663_v5 = vpop.xlane.xlu0 %662  ;;  %v669_v3 = vpop.xlane.xlu1 %668  ;;  %v793_v8 = vsel %vm737_vm4, %v732_v46, 0.0 }
 0x235   :  { %v788_v24 = vadd.f32 %v787_v53, %v786_v52  ;;  %v699_v37 = vsub.f32 %v441_v38, %v663_v5 }
 0x236   :  { %v444_v48 = vadd.f32 %v411_v15, %v2420_v39 }
 0x237   :  { %v1187_v10 = vpop.eup %1186  ;;  %v790_v60 = vadd.f32 %v789_v57, %v788_v24  ;;  %v731_v51 = vsel %vm2423_vm11, %v699_v37, 0.0 }
 0x238   :  { %v413_v22 = vmul.f32 0.6931472, %v1187_v10  ;;  %v702_v27 = vsub.f32 %v444_v48, %v669_v3  ;;  %v791_v54 = vsel %vm737_vm4, %v731_v51, 0.0  ;;  %v667_v19 = vpop.xlane.xlu0 %666  ;;  %v1189_v39 = vpop.eup %1188 }
 0x239   :  { %v792_v23 = vadd.f32 %v791_v54, %v790_v60  ;;  %v701_v1 = vsub.f32 %v443_v20, %v667_v19 }
 0x23a   :  { %v445_v14 = vadd.f32 %v413_v22, %v2425_v28  ;;  %v734_v29 = vsel %vm124_vm3, %v702_v27, 0.0  ;;  %vm957_vm3 = vcmp.lt.f32.partialorder %v956_v12, 1.0 }
 0x23b   :  { %v794_v36 = vadd.f32 %v793_v8, %v792_v23  ;;  %v733_v45 = vsel %vm123_vm15, %v701_v1, 0.0  ;;  %v797_v18 = vsel %vm737_vm4, %v734_v29, 0.0  ;;  %v961_v33 = vsel %vm957_vm3, %v959_v63, %v1041_v50 }
 0x23c   :  { %v795_v55 = vsel %vm737_vm4, %v733_v45, 0.0  ;;  %v671_v41 = vpop.xlane.xlu0 %670 }
 0x23d   :  { %v796_v7 = vadd.f32 %v795_v55, %v794_v36  ;;  %v703_v40 = vsub.f32 %v445_v14, %v671_v41 }
 0x23f   :  { %v735_v0 = vsel %vm125_vm7, %v703_v40, 0.0  ;;  %v798_v21 = vadd.f32 %v797_v18, %v796_v7 }
 0x240   :  { %v799_v35 = vsel %vm737_vm4, %v735_v0, 0.0  ;;  %v942_v49 = vpop.xlane.xlu0 %941 }
 0x241   :  { %v800_v13 = vadd.f32 %v799_v35, %v798_v21  ;;  %v943_v26 = vrot.slane %v942_v49, 4 }
 0x243   :  { %801 = vadd.xlane.f32.xlu1 %v800_v13  ;;  %v944_v61 = vadd.f32 %v943_v26, %v942_v49 }
 0x245   :  { %v945_v58 = vrot.slane %v944_v61, 2 }
 0x247   :  { %963 = vadd.xlane.f32.xlu1 %v961_v33  ;;  %v946_v38 = vadd.f32 %v945_v58, %v944_v61 }
 0x249   :  { %v947_v11 = vrot.slane %v946_v38, 1 }
 0x24b   :  { %v948_v24 = vadd.f32 %v947_v11, %v946_v38 }
 0x2d0   :  { %v802_v47 = vpop.xlane.xlu1 %801 }
 0x2d1   :  { %v803_v52 = vrot.slane %v802_v47, 4 }
 0x2d3   :  { %v804_v62 = vadd.f32 %v803_v52, %v802_v47 }
 0x2d4   :  { %v964_v43 = vpop.xlane.xlu1 %963 }
 0x2d5   :  { %v805_v59 = vrot.slane %v804_v62, 2  ;;  %v965_v34 = vrot.slane %v964_v43, 4 }
 0x2d7   :  { %v806_v2 = vadd.f32 %v805_v59, %v804_v62  ;;  %v966_v25 = vadd.f32 %v965_v34, %v964_v43 }
 0x2d9   :  { %v807_v30 = vrot.slane %v806_v2, 1  ;;  %v967_v15 = vrot.slane %v966_v25, 2 }
 0x2db   :  { %v808_v53 = vadd.f32 %v807_v30, %v806_v2  ;;  %v968_v5 = vadd.f32 %v967_v15, %v966_v25 }
 0x2dd   :  { %1045 = vpush %v808_v53  ;;  %v969_v37 = vrot.slane %v968_v5, 1 }
 0x2de   :  { %1047 = vpush %v948_v24 }
 0x2df   :  { %v970_v32 = vadd.f32 %v969_v37, %v968_v5 }
 0x2e1   :  { %1049 = vpush %v970_v32 }
 0x30e   :  { %s1046_s27 = spop %1045 }
 0x30f   :  { %s1048_s28 = spop %1047 }
 0x310   :  { %v982_v57 = vstv %s1048_s28 }
 0x311   :  { %1190 = vrcp.f32 %v982_v57 }
 0x312   :  { %s1050_s29 = spop %1049 }
 0x31b   :  { %v1191_v48 = vpop.eup %1190 }
 0x31c   :  { %1051 = vpush %v1191_v48 }
 0x31d   :  { %1053 = vpush %v1189_v39 }
 0x34d   :  { %s1052_s30 = spop %1051 }
 0x34e   :  { %s985_s6 = smul.f32 %s1052_s30, %s1046_s27  ;;  %s1054_s7 = spop %1053 }
 0x34f   :  { %s991_s8 = smul.f32 %s1054_s7, %s1050_s29 }
 0x351   :  { %s992_s9 = sadd.f32 %s991_s8, %s985_s6 }
 0x353   :  { %994 = sst [smem:[#allocation5]] %s992_s9 }
 0x354   :  { %1202 = shalt.err (!%p1199_p2)
}
 0x355   :  { %s1207_s16 = smov [#allocation5]  }
 0x356   :  { %1002 = dma.smem_to_hbm %s1207_s16, 16, %s2183_s5, [#allocation6]  }
 0x357   :  { %1203 = dma.done.wait [#allocation6], 16  }
 0x358   :  { %1204 = vsyncadd [#allocation6], 4294967280 }
 0x359   :  { %1006 = sfence }
 0x35a   :  { %1007 = vsyncpa [#allocation6], 1 }

</bundles_post_ra>
